<compile_context>
chip_gen: v7x
topology: tpu7x:2x2x1
jax: 0.10.0
libtpu: 0.0.40
codegen_flags: <defaults>
</compile_context>

<pallas_src>
import jax
import jax.numpy as jnp
from jax.experimental import pallas as pl
from jax.experimental.pallas import tpu as pltpu


_SQRT_2_OVER_PI = 0.7978845608028654


def _gelu_tanh(x):
    # TODO(synk): PyTorch F.gelu defaults to the exact erf form; erf is not a
    # guaranteed Mosaic lowering, so we use the tanh approximation
    # (== F.gelu(approximate='tanh'), ~1e-3 max abs deviation).
    return 0.5 * x * (1.0 + jnp.tanh(_SQRT_2_OVER_PI * (x + 0.044715 * x * x * x)))


def gdfn_kernel(xs_ref, xt_ref, xb_ref,
                w_in_ref, b_in_ref, w_dw_ref, b_dw_ref, w_out_ref, b_out_ref,
                o_ref, ypad_ref):
    """Fused GDFN forward for one (image, H-strip) grid point, NHWC layout.

    xs_ref   : (1, tH, W, C)      input strip
    xt_ref   : (1, HB, W, C)      row band just above the strip (halo source)
    xb_ref   : (1, HB, W, C)      row band just below the strip (halo source)
    w_in_ref : (2, C, Hf)         project_in weight, split into the 2 C2-halves
    b_in_ref : (2, 1, Hf)   f32
    w_dw_ref : (2, 9, Hf)   f32   depthwise 3x3 weights, tap-major (ky*3+kx)
    b_dw_ref : (2, 1, Hf)   f32
    w_out_ref: (Hf, C)            project_out weight
    b_out_ref: (1, C)       f32
    o_ref    : (1, tH, W, C)      output strip
    ypad_ref : (2, tH+2, W+2, Hf) f32 VMEM scratch (halo-padded project_in out)
    """
    tH = o_ref.shape[1]
    W = o_ref.shape[2]
    C = o_ref.shape[3]
    Hf = w_in_ref.shape[2]
    HB = xt_ref.shape[1]

    s = pl.program_id(1)
    num_strips = pl.num_programs(1)

    # ---- gather strip + 1-row halos; pixels go onto the sublane axis -------
    x_top = xt_ref[0, HB - 1][None]                       # (1, W, C)
    x_bot = xb_ref[0, 0][None]                            # (1, W, C)
    x_strip = xs_ref[0]                                   # (tH, W, C)
    pix = jnp.concatenate([x_top, x_strip, x_bot], axis=0)        # (tH+2, W, C)
    pix2d = pix.reshape((tH + 2) * W, C)

    # ---- project_in (1x1 conv): one MXU matmul per C2-half -----------------
    # Operands stay in the model dtype (bf16-native when the model is bf16);
    # accumulation is f32.  Halo rows ride along in the same matmul.
    for h in range(2):
        y = jnp.dot(pix2d, w_in_ref[h], preferred_element_type=jnp.float32)
        y = y + b_in_ref[h]                                       # (P, Hf) f32
        ypad_ref[h, :, 1:W + 1, :] = y.reshape(tH + 2, W, Hf)

    # ---- conv zero-padding: zero only what is never overwritten ------------
    ypad_ref[:, :, 0:1, :] = jnp.zeros((2, tH + 2, 1, Hf), jnp.float32)
    ypad_ref[:, :, W + 1:W + 2, :] = jnp.zeros((2, tH + 2, 1, Hf), jnp.float32)

    @pl.when(s == 0)                      # no strip above: top halo is padding
    def _():
        ypad_ref[:, 0:1, :, :] = jnp.zeros((2, 1, W + 2, Hf), jnp.float32)

    @pl.when(s == num_strips - 1)         # no strip below: bottom halo padding
    def _():
        ypad_ref[:, tH + 1:tH + 2, :, :] = jnp.zeros((2, 1, W + 2, Hf),
                                                     jnp.float32)

    # ---- 3x3 depthwise conv: 9 shifted taps, per-channel weights (VPU) -----
    halves = []
    for h in range(2):
        dw = None
        for dy in range(3):
            for dx in range(3):
                k = dy * 3 + dx
                tap = ypad_ref[h, dy:dy + tH, dx:dx + W, :]       # (tH, W, Hf)
                contrib = tap * w_dw_ref[h, k:k + 1, :]
                dw = contrib if dw is None else dw + contrib
        halves.append(dw + b_dw_ref[h])

    # ---- gating: gelu(x1) * x2 ---------------------------------------------
    gated = _gelu_tanh(halves[0]) * halves[1]                     # (tH, W, Hf)
    gated2d = gated.reshape(tH * W, Hf)

    # ---- project_out (1x1 conv): one MXU matmul -----------------------------
    out = jnp.dot(gated2d.astype(w_out_ref.dtype), w_out_ref[...],
                  preferred_element_type=jnp.float32)
    out = out + b_out_ref[...]                                    # (P, C) f32
    o_ref[0] = out.reshape(tH, W, C).astype(o_ref.dtype)


def _pick_tile_h(H, W, C, Hf, itemsize, budget_bytes):
    """Largest H-strip height (multiple of 8 dividing H) fitting the budget."""
    if H % 8 != 0:
        return H          # odd sizes: single whole-image strip (rare, small)

    def est_bytes(t):
        io = 2 * (2 * t + 2 * 8) * W * C * itemsize     # dbl-buffered in/out + halo bands
        ypad = 2 * (t + 2) * (W + 2) * Hf * 4
        live = 8 * t * W * Hf * 4 + 2 * (t + 2) * W * max(C, Hf) * 4
        return io + ypad + live

    best = 8
    for t in range(8, H + 1, 8):
        if H % t == 0 and est_bytes(t) <= budget_bytes:
            best = t
    return best


def gdfn_forward(x_nchw, w_in, b_in, w_dw, b_dw, w_out, b_out, *,
                 tile_h=None, vmem_budget_bytes=28 * 1024 * 1024):
    """GDFN.forward for NCHW input with PyTorch Conv2d weight layouts.

    x_nchw : (N, C, H, W)
    w_in   : (2*hidden, C, 1, 1),  b_in : (2*hidden,)
    w_dw   : (2*hidden, 1, 3, 3),  b_dw : (2*hidden,)
    w_out  : (C, hidden, 1, 1),    b_out: (C,)
    returns: (N, C, H, W)
    """
    N, C, H, W = x_nchw.shape
    C2 = w_in.shape[0]
    Hf = C2 // 2
    dtype = x_nchw.dtype
    itemsize = jnp.dtype(dtype).itemsize

    # TODO(synk): a production pipeline should keep activations NHWC end-to-end
    # (or relayout inside the kernel); each transpose here is a full HBM pass.
    x_nhwc = jnp.transpose(x_nchw, (0, 2, 3, 1))

    # One-off weight re-layouts, pre-split into the two C2 halves so the gate's
    # chunk(2) never slices the lane axis.  Constant index_maps keep them
    # VMEM-resident across the whole grid.
    w_in_s = jnp.transpose(w_in.reshape(2, Hf, C), (0, 2, 1)).astype(dtype)     # (2, C, Hf)
    b_in_s = b_in.reshape(2, 1, Hf).astype(jnp.float32)
    w_dw_s = jnp.transpose(w_dw.reshape(2, Hf, 9), (0, 2, 1)).astype(jnp.float32)  # (2, 9, Hf)
    b_dw_s = b_dw.reshape(2, 1, Hf).astype(jnp.float32)
    w_out_m = jnp.transpose(w_out.reshape(C, Hf), (1, 0)).astype(dtype)         # (Hf, C)
    b_out_m = b_out.reshape(1, C).astype(jnp.float32)

    if tile_h is None:
        tile_h = _pick_tile_h(H, W, C, Hf, itemsize, vmem_budget_bytes)
    assert H % tile_h == 0 and (tile_h % 8 == 0 or tile_h == H), (H, tile_h)
    num_strips = H // tile_h
    HB = min(8, H)                              # halo source band height
    nb = tile_h // HB if num_strips > 1 else 1  # 8-row blocks per strip
    n_hblocks = -(-H // HB)

    if num_strips > 1:
        top_map = lambda n, s: (n, jnp.maximum(s * nb - 1, 0), 0, 0)
        bot_map = lambda n, s: (n, jnp.minimum((s + 1) * nb, n_hblocks - 1), 0, 0)
    else:  # single strip: halo rows are zeroed in-kernel, content unused
        top_map = lambda n, s: (n, 0, 0, 0)
        bot_map = lambda n, s: (n, 0, 0, 0)

    est = (2 * 2 * tile_h * W * C * itemsize
           + 2 * 2 * 2 * HB * W * C * itemsize
           + 2 * (tile_h + 2) * (W + 2) * Hf * 4
           + 8 * tile_h * W * Hf * 4
           + 2 * (C * C2 + 9 * C2 + Hf * C) * 4 + 4096)
    vmem_limit = int(min(96 * 2**20, max(2 * est, 16 * 2**20)))

    out_nhwc = pl.pallas_call(
        gdfn_kernel,
        out_shape=jax.ShapeDtypeStruct((N, H, W, C), dtype),
        grid=(N, num_strips),
        in_specs=[
            pl.BlockSpec((1, tile_h, W, C), lambda n, s: (n, s, 0, 0)),
            pl.BlockSpec((1, HB, W, C), top_map),
            pl.BlockSpec((1, HB, W, C), bot_map),
            pl.BlockSpec((2, C, Hf), lambda n, s: (0, 0, 0)),
            pl.BlockSpec((2, 1, Hf), lambda n, s: (0, 0, 0)),
            pl.BlockSpec((2, 9, Hf), lambda n, s: (0, 0, 0)),
            pl.BlockSpec((2, 1, Hf), lambda n, s: (0, 0, 0)),
            pl.BlockSpec((Hf, C), lambda n, s: (0, 0)),
            pl.BlockSpec((1, C), lambda n, s: (0, 0)),
        ],
        out_specs=pl.BlockSpec((1, tile_h, W, C), lambda n, s: (n, s, 0, 0)),
        scratch_shapes=[pltpu.VMEM((2, tile_h + 2, W + 2, Hf), jnp.float32)],
        compiler_params=pltpu.CompilerParams(
            dimension_semantics=("parallel", "parallel"),
            vmem_limit_bytes=vmem_limit),
    )(x_nhwc, x_nhwc, x_nhwc, w_in_s, b_in_s, w_dw_s, b_dw_s, w_out_m, b_out_m)

    return jnp.transpose(out_nhwc, (0, 3, 1, 2))


def reference_forward(x, w_in, b_in, w_dw, b_dw, w_out, b_out):
    """Pure-JAX reference (lax convs + same tanh-GELU) for validation."""
    dn = ("NCHW", "OIHW", "NCHW")
    y = jax.lax.conv_general_dilated(x, w_in, (1, 1), "VALID",
                                     dimension_numbers=dn)
    y = y + b_in[None, :, None, None]
    C2 = y.shape[1]
    y = jax.lax.conv_general_dilated(y, w_dw, (1, 1), ((1, 1), (1, 1)),
                                     dimension_numbers=dn,
                                     feature_group_count=C2)
    y = y + b_dw[None, :, None, None]
    Hf = C2 // 2
    x1, x2 = y[:, :Hf], y[:, Hf:]
    z = _gelu_tanh(x1) * x2
    out = jax.lax.conv_general_dilated(z, w_out, (1, 1), "VALID",
                                       dimension_numbers=dn)
    return out + b_out[None, :, None, None]


if __name__ == "__main__":
    key = jax.random.PRNGKey(0)

    def make_params(k, dim, ffn_expansion_factor):
        hidden = int(dim * ffn_expansion_factor)
        C2 = 2 * hidden
        ks = jax.random.split(k, 6)
        w_in = jax.random.normal(ks[0], (C2, dim, 1, 1), jnp.float32) * 0.2
        b_in = jax.random.normal(ks[1], (C2,), jnp.float32) * 0.1
        w_dw = jax.random.normal(ks[2], (C2, 1, 3, 3), jnp.float32) * 0.2
        b_dw = jax.random.normal(ks[3], (C2,), jnp.float32) * 0.1
        w_out = jax.random.normal(ks[4], (dim, hidden, 1, 1), jnp.float32) * 0.2
        b_out = jax.random.normal(ks[5], (dim,), jnp.float32) * 0.1
        return (w_in, b_in, w_dw, b_dw, w_out, b_out)

    k1, k2, k3, k4 = jax.random.split(key, 4)

    # Case 1: GDFN(dim=4, ffn_expansion_factor=2) on (2, 4, 16, 16), forced
    # 8-row strips -> grid (2, 2): exercises the inter-strip halo path.
    x1 = jax.random.normal(k1, (2, 4, 16, 16), jnp.float32)
    p1 = make_params(k2, 4, 2.0)
    out1 = jax.block_until_ready(gdfn_forward(x1, *p1, tile_h=8))
    ref1 = reference_forward(x1, *p1)
    assert out1.shape == ref1.shape, (out1.shape, ref1.shape)
    err1 = float(jnp.max(jnp.abs(out1 - ref1)))
    assert err1 < 1e-4, err1

    # Case 2: odd hidden width (Hf=9), non-square spatial, auto strip pick.
    x2 = jax.random.normal(k3, (1, 6, 16, 24), jnp.float32)
    p2 = make_params(k4, 6, 1.5)
    out2 = jax.block_until_ready(gdfn_forward(x2, *p2))
    ref2 = reference_forward(x2, *p2)
    assert out2.shape == ref2.shape, (out2.shape, ref2.shape)
    err2 = float(jnp.max(jnp.abs(out2 - ref2)))
    assert err2 < 1e-4, err2

    print("KERNEL_OK")
</pallas_src>

<mosaic_0001>
module attributes {stable_mosaic.version = 11 : i64} {
  func.func @gdfn_kernel(%arg0: i32, %arg1: i32, %arg2: memref<1x8x16x4xf32, #tpu.memory_space<vmem>>, %arg3: memref<1x8x16x4xf32, #tpu.memory_space<vmem>>, %arg4: memref<1x8x16x4xf32, #tpu.memory_space<vmem>>, %arg5: memref<2x4x8xf32, #tpu.memory_space<vmem>>, %arg6: memref<2x1x8xf32, #tpu.memory_space<vmem>>, %arg7: memref<2x9x8xf32, #tpu.memory_space<vmem>>, %arg8: memref<2x1x8xf32, #tpu.memory_space<vmem>>, %arg9: memref<8x4xf32, #tpu.memory_space<vmem>>, %arg10: memref<1x4xf32, #tpu.memory_space<vmem>>, %arg11: memref<1x8x16x4xf32, #tpu.memory_space<vmem>>, %arg12: memref<2x10x18x8xf32, #tpu.memory_space<vmem>>) attributes {dimension_semantics = [#tpu.dimension_semantics<parallel>, #tpu.dimension_semantics<parallel>], iteration_bounds = array<i64: 2, 2>, scalar_prefetch = 0 : i64, scratch_operands = 1 : i64, tpu.core_type = #tpu.core_type<tc>, window_params = [{transform_indices = @transform_0, window_bounds = array<i64: 1, 8, 16, 4>}, {transform_indices = @transform_1, window_bounds = array<i64: 1, 8, 16, 4>}, {transform_indices = @transform_2, window_bounds = array<i64: 1, 8, 16, 4>}, {pipeline_mode = #tpu.pipeline_mode<synchronous>, transform_indices = @transform_3, window_bounds = array<i64: 2, 4, 8>}, {pipeline_mode = #tpu.pipeline_mode<synchronous>, transform_indices = @transform_4, window_bounds = array<i64: 2, 1, 8>}, {pipeline_mode = #tpu.pipeline_mode<synchronous>, transform_indices = @transform_5, window_bounds = array<i64: 2, 9, 8>}, {pipeline_mode = #tpu.pipeline_mode<synchronous>, transform_indices = @transform_6, window_bounds = array<i64: 2, 1, 8>}, {pipeline_mode = #tpu.pipeline_mode<synchronous>, transform_indices = @transform_7, window_bounds = array<i64: 8, 4>}, {pipeline_mode = #tpu.pipeline_mode<synchronous>, transform_indices = @transform_8, window_bounds = array<i64: 1, 4>}, {transform_indices = @transform_9, window_bounds = array<i64: 1, 8, 16, 4>}]} {
    %c0 = arith.constant 0 : index
    %c7 = arith.constant 7 : index
    %c0_0 = arith.constant 0 : index
    %c0_1 = arith.constant 0 : index
    %0 = vector.load %arg3[%c0, %c7, %c0_0, %c0_1] : memref<1x8x16x4xf32, #tpu.memory_space<vmem>>, vector<1x1x16x4xf32>
    %1 = vector.shape_cast %0 : vector<1x1x16x4xf32> to vector<16x4xf32>
    %2 = vector.shape_cast %1 : vector<16x4xf32> to vector<1x16x4xf32>
    %c0_2 = arith.constant 0 : index
    %c0_3 = arith.constant 0 : index
    %c0_4 = arith.constant 0 : index
    %c0_5 = arith.constant 0 : index
    %3 = vector.load %arg4[%c0_2, %c0_3, %c0_4, %c0_5] : memref<1x8x16x4xf32, #tpu.memory_space<vmem>>, vector<1x1x16x4xf32>
    %4 = vector.shape_cast %3 : vector<1x1x16x4xf32> to vector<16x4xf32>
    %5 = vector.shape_cast %4 : vector<16x4xf32> to vector<1x16x4xf32>
    %c0_6 = arith.constant 0 : index
    %c0_7 = arith.constant 0 : index
    %c0_8 = arith.constant 0 : index
    %c0_9 = arith.constant 0 : index
    %6 = vector.load %arg2[%c0_6, %c0_7, %c0_8, %c0_9] : memref<1x8x16x4xf32, #tpu.memory_space<vmem>>, vector<1x8x16x4xf32>
    %7 = vector.shape_cast %6 : vector<1x8x16x4xf32> to vector<8x16x4xf32>
    %8 = tpu.concatenate %2, %7, %5 in 0 : vector<1x16x4xf32>, vector<8x16x4xf32>, vector<1x16x4xf32> -> vector<10x16x4xf32>
    %9 = vector.shape_cast %8 : vector<10x16x4xf32> to vector<160x4xf32>
    %c0_10 = arith.constant 0 : index
    %c0_11 = arith.constant 0 : index
    %c0_12 = arith.constant 0 : index
    %10 = vector.load %arg5[%c0_10, %c0_11, %c0_12] : memref<2x4x8xf32, #tpu.memory_space<vmem>>, vector<1x4x8xf32>
    %11 = vector.shape_cast %10 : vector<1x4x8xf32> to vector<4x8xf32>
    %cst = arith.constant dense<0.000000e+00> : vector<160x8xf32>
    %12 = tpu.matmul %9, %11, %cst {dimension_numbers = #tpu.dot_dimension_numbers<[1], [0], [0], [1], [0, 0, 1, 1], [], []>} : vector<160x4xf32>, vector<4x8xf32>, vector<160x8xf32> -> vector<160x8xf32>
    %c0_13 = arith.constant 0 : index
    %c0_14 = arith.constant 0 : index
    %c0_15 = arith.constant 0 : index
    %13 = vector.load %arg6[%c0_13, %c0_14, %c0_15] : memref<2x1x8xf32, #tpu.memory_space<vmem>>, vector<1x1x8xf32>
    %14 = vector.shape_cast %13 : vector<1x1x8xf32> to vector<1x8xf32>
    %15 = vector.broadcast %14 : vector<1x8xf32> to vector<160x8xf32>
    %16 = arith.addf %12, %15 : vector<160x8xf32>
    %17 = vector.shape_cast %16 : vector<160x8xf32> to vector<10x16x8xf32>
    %c0_16 = arith.constant 0 : index
    %c0_17 = arith.constant 0 : index
    %c1 = arith.constant 1 : index
    %c0_18 = arith.constant 0 : index
    %18 = vector.load %arg12[%c0_16, %c0_17, %c1, %c0_18] : memref<2x10x18x8xf32, #tpu.memory_space<vmem>>, vector<1x10x16x8xf32>
    %19 = vector.shape_cast %18 : vector<1x10x16x8xf32> to vector<10x16x8xf32>
    %20 = vector.shape_cast %17 : vector<10x16x8xf32> to vector<1x10x16x8xf32>
    tpu.vector_store %arg12[%c0_16, %c0_17, %c1, %c0_18], %20 {strides = array<i32>} : memref<2x10x18x8xf32, #tpu.memory_space<vmem>>, vector<1x10x16x8xf32>,
    %c1_19 = arith.constant 1 : index
    %c0_20 = arith.constant 0 : index
    %c0_21 = arith.constant 0 : index
    %21 = vector.load %arg5[%c1_19, %c0_20, %c0_21] : memref<2x4x8xf32, #tpu.memory_space<vmem>>, vector<1x4x8xf32>
    %22 = vector.shape_cast %21 : vector<1x4x8xf32> to vector<4x8xf32>
    %cst_22 = arith.constant dense<0.000000e+00> : vector<160x8xf32>
    %23 = tpu.matmul %9, %22, %cst_22 {dimension_numbers = #tpu.dot_dimension_numbers<[1], [0], [0], [1], [0, 0, 1, 1], [], []>} : vector<160x4xf32>, vector<4x8xf32>, vector<160x8xf32> -> vector<160x8xf32>
    %c1_23 = arith.constant 1 : index
    %c0_24 = arith.constant 0 : index
    %c0_25 = arith.constant 0 : index
    %24 = vector.load %arg6[%c1_23, %c0_24, %c0_25] : memref<2x1x8xf32, #tpu.memory_space<vmem>>, vector<1x1x8xf32>
    %25 = vector.shape_cast %24 : vector<1x1x8xf32> to vector<1x8xf32>
    %26 = vector.broadcast %25 : vector<1x8xf32> to vector<160x8xf32>
    %27 = arith.addf %23, %26 : vector<160x8xf32>
    %28 = vector.shape_cast %27 : vector<160x8xf32> to vector<10x16x8xf32>
    %c1_26 = arith.constant 1 : index
    %c0_27 = arith.constant 0 : index
    %c1_28 = arith.constant 1 : index
    %c0_29 = arith.constant 0 : index
    %29 = vector.load %arg12[%c1_26, %c0_27, %c1_28, %c0_29] : memref<2x10x18x8xf32, #tpu.memory_space<vmem>>, vector<1x10x16x8xf32>
    %30 = vector.shape_cast %29 : vector<1x10x16x8xf32> to vector<10x16x8xf32>
    %31 = vector.shape_cast %28 : vector<10x16x8xf32> to vector<1x10x16x8xf32>
    tpu.vector_store %arg12[%c1_26, %c0_27, %c1_28, %c0_29], %31 {strides = array<i32>} : memref<2x10x18x8xf32, #tpu.memory_space<vmem>>, vector<1x10x16x8xf32>,
    %cst_30 = arith.constant 0.000000e+00 : f32
    %32 = vector.broadcast %cst_30 : f32 to vector<2x10x1x8xf32>
    %c0_31 = arith.constant 0 : index
    %c0_32 = arith.constant 0 : index
    %c0_33 = arith.constant 0 : index
    %c0_34 = arith.constant 0 : index
    %33 = vector.load %arg12[%c0_31, %c0_32, %c0_33, %c0_34] : memref<2x10x18x8xf32, #tpu.memory_space<vmem>>, vector<2x10x1x8xf32>
    tpu.vector_store %arg12[%c0_31, %c0_32, %c0_33, %c0_34], %32 {strides = array<i32>} : memref<2x10x18x8xf32, #tpu.memory_space<vmem>>, vector<2x10x1x8xf32>,
    %cst_35 = arith.constant 0.000000e+00 : f32
    %34 = vector.broadcast %cst_35 : f32 to vector<2x10x1x8xf32>
    %c0_36 = arith.constant 0 : index
    %c0_37 = arith.constant 0 : index
    %c17 = arith.constant 17 : index
    %c0_38 = arith.constant 0 : index
    %35 = vector.load %arg12[%c0_36, %c0_37, %c17, %c0_38] : memref<2x10x18x8xf32, #tpu.memory_space<vmem>>, vector<2x10x1x8xf32>
    tpu.vector_store %arg12[%c0_36, %c0_37, %c17, %c0_38], %34 {strides = array<i32>} : memref<2x10x18x8xf32, #tpu.memory_space<vmem>>, vector<2x10x1x8xf32>,
    %c0_i32 = arith.constant 0 : i32
    %36 = arith.cmpi eq, %arg1, %c0_i32 : i32
    %37 = arith.extui %36 : i1 to i32
    %c0_i32_39 = arith.constant 0 : i32
    %38 = arith.cmpi ne, %37, %c0_i32_39 : i32
    scf.if %38 {
      %cst_180 = arith.constant 0.000000e+00 : f32
      %218 = vector.broadcast %cst_180 : f32 to vector<2x1x18x8xf32>
      %c0_181 = arith.constant 0 : index
      %c0_182 = arith.constant 0 : index
      %c0_183 = arith.constant 0 : index
      %c0_184 = arith.constant 0 : index
      %219 = vector.load %arg12[%c0_181, %c0_182, %c0_183, %c0_184] : memref<2x10x18x8xf32, #tpu.memory_space<vmem>>, vector<2x1x18x8xf32>
      tpu.vector_store %arg12[%c0_181, %c0_182, %c0_183, %c0_184], %218 {strides = array<i32>} : memref<2x10x18x8xf32, #tpu.memory_space<vmem>>, vector<2x1x18x8xf32>,
    } else {
    }
    %c1_i32 = arith.constant 1 : i32
    %39 = arith.cmpi eq, %arg1, %c1_i32 : i32
    %40 = arith.extui %39 : i1 to i32
    %c0_i32_40 = arith.constant 0 : i32
    %41 = arith.cmpi ne, %40, %c0_i32_40 : i32
    scf.if %41 {
      %cst_180 = arith.constant 0.000000e+00 : f32
      %218 = vector.broadcast %cst_180 : f32 to vector<2x1x18x8xf32>
      %c0_181 = arith.constant 0 : index
      %c9 = arith.constant 9 : index
      %c0_182 = arith.constant 0 : index
      %c0_183 = arith.constant 0 : index
      %219 = vector.load %arg12[%c0_181, %c9, %c0_182, %c0_183] : memref<2x10x18x8xf32, #tpu.memory_space<vmem>>, vector<2x1x18x8xf32>
      tpu.vector_store %arg12[%c0_181, %c9, %c0_182, %c0_183], %218 {strides = array<i32>} : memref<2x10x18x8xf32, #tpu.memory_space<vmem>>, vector<2x1x18x8xf32>,
    } else {
    }
    %c0_41 = arith.constant 0 : index
    %c0_42 = arith.constant 0 : index
    %c0_43 = arith.constant 0 : index
    %c0_44 = arith.constant 0 : index
    %42 = vector.load %arg12[%c0_41, %c0_42, %c0_43, %c0_44] : memref<2x10x18x8xf32, #tpu.memory_space<vmem>>, vector<1x8x16x8xf32>
    %43 = vector.shape_cast %42 : vector<1x8x16x8xf32> to vector<8x16x8xf32>
    %c0_45 = arith.constant 0 : index
    %c0_46 = arith.constant 0 : index
    %c0_47 = arith.constant 0 : index
    %44 = vector.load %arg7[%c0_45, %c0_46, %c0_47] : memref<2x9x8xf32, #tpu.memory_space<vmem>>, vector<1x1x8xf32>
    %45 = vector.shape_cast %44 : vector<1x1x8xf32> to vector<1x8xf32>
    %46 = vector.shape_cast %45 : vector<1x8xf32> to vector<1x1x8xf32>
    %47 = vector.broadcast %46 : vector<1x1x8xf32> to vector<8x16x8xf32>
    %48 = arith.mulf %43, %47 : vector<8x16x8xf32>
    %c0_48 = arith.constant 0 : index
    %c0_49 = arith.constant 0 : index
    %c1_50 = arith.constant 1 : index
    %c0_51 = arith.constant 0 : index
    %49 = vector.load %arg12[%c0_48, %c0_49, %c1_50, %c0_51] : memref<2x10x18x8xf32, #tpu.memory_space<vmem>>, vector<1x8x16x8xf32>
    %50 = vector.shape_cast %49 : vector<1x8x16x8xf32> to vector<8x16x8xf32>
    %c0_52 = arith.constant 0 : index
    %c1_53 = arith.constant 1 : index
    %c0_54 = arith.constant 0 : index
    %51 = vector.load %arg7[%c0_52, %c1_53, %c0_54] : memref<2x9x8xf32, #tpu.memory_space<vmem>>, vector<1x1x8xf32>
    %52 = vector.shape_cast %51 : vector<1x1x8xf32> to vector<1x8xf32>
    %53 = vector.shape_cast %52 : vector<1x8xf32> to vector<1x1x8xf32>
    %54 = vector.broadcast %53 : vector<1x1x8xf32> to vector<8x16x8xf32>
    %55 = arith.mulf %50, %54 : vector<8x16x8xf32>
    %56 = arith.addf %48, %55 : vector<8x16x8xf32>
    %c0_55 = arith.constant 0 : index
    %c0_56 = arith.constant 0 : index
    %c2 = arith.constant 2 : index
    %c0_57 = arith.constant 0 : index
    %57 = vector.load %arg12[%c0_55, %c0_56, %c2, %c0_57] : memref<2x10x18x8xf32, #tpu.memory_space<vmem>>, vector<1x8x16x8xf32>
    %58 = vector.shape_cast %57 : vector<1x8x16x8xf32> to vector<8x16x8xf32>
    %c0_58 = arith.constant 0 : index
    %c2_59 = arith.constant 2 : index
    %c0_60 = arith.constant 0 : index
    %59 = vector.load %arg7[%c0_58, %c2_59, %c0_60] : memref<2x9x8xf32, #tpu.memory_space<vmem>>, vector<1x1x8xf32>
    %60 = vector.shape_cast %59 : vector<1x1x8xf32> to vector<1x8xf32>
    %61 = vector.shape_cast %60 : vector<1x8xf32> to vector<1x1x8xf32>
    %62 = vector.broadcast %61 : vector<1x1x8xf32> to vector<8x16x8xf32>
    %63 = arith.mulf %58, %62 : vector<8x16x8xf32>
    %64 = arith.addf %56, %63 : vector<8x16x8xf32>
    %c0_61 = arith.constant 0 : index
    %c1_62 = arith.constant 1 : index
    %c0_63 = arith.constant 0 : index
    %c0_64 = arith.constant 0 : index
    %65 = vector.load %arg12[%c0_61, %c1_62, %c0_63, %c0_64] : memref<2x10x18x8xf32, #tpu.memory_space<vmem>>, vector<1x8x16x8xf32>
    %66 = vector.shape_cast %65 : vector<1x8x16x8xf32> to vector<8x16x8xf32>
    %c0_65 = arith.constant 0 : index
    %c3 = arith.constant 3 : index
    %c0_66 = arith.constant 0 : index
    %67 = vector.load %arg7[%c0_65, %c3, %c0_66] : memref<2x9x8xf32, #tpu.memory_space<vmem>>, vector<1x1x8xf32>
    %68 = vector.shape_cast %67 : vector<1x1x8xf32> to vector<1x8xf32>
    %69 = vector.shape_cast %68 : vector<1x8xf32> to vector<1x1x8xf32>
    %70 = vector.broadcast %69 : vector<1x1x8xf32> to vector<8x16x8xf32>
    %71 = arith.mulf %66, %70 : vector<8x16x8xf32>
    %72 = arith.addf %64, %71 : vector<8x16x8xf32>
    %c0_67 = arith.constant 0 : index
    %c1_68 = arith.constant 1 : index
    %c1_69 = arith.constant 1 : index
    %c0_70 = arith.constant 0 : index
    %73 = vector.load %arg12[%c0_67, %c1_68, %c1_69, %c0_70] : memref<2x10x18x8xf32, #tpu.memory_space<vmem>>, vector<1x8x16x8xf32>
    %74 = vector.shape_cast %73 : vector<1x8x16x8xf32> to vector<8x16x8xf32>
    %c0_71 = arith.constant 0 : index
    %c4 = arith.constant 4 : index
    %c0_72 = arith.constant 0 : index
    %75 = vector.load %arg7[%c0_71, %c4, %c0_72] : memref<2x9x8xf32, #tpu.memory_space<vmem>>, vector<1x1x8xf32>
    %76 = vector.shape_cast %75 : vector<1x1x8xf32> to vector<1x8xf32>
    %77 = vector.shape_cast %76 : vector<1x8xf32> to vector<1x1x8xf32>
    %78 = vector.broadcast %77 : vector<1x1x8xf32> to vector<8x16x8xf32>
    %79 = arith.mulf %74, %78 : vector<8x16x8xf32>
    %80 = arith.addf %72, %79 : vector<8x16x8xf32>
    %c0_73 = arith.constant 0 : index
    %c1_74 = arith.constant 1 : index
    %c2_75 = arith.constant 2 : index
    %c0_76 = arith.constant 0 : index
    %81 = vector.load %arg12[%c0_73, %c1_74, %c2_75, %c0_76] : memref<2x10x18x8xf32, #tpu.memory_space<vmem>>, vector<1x8x16x8xf32>
    %82 = vector.shape_cast %81 : vector<1x8x16x8xf32> to vector<8x16x8xf32>
    %c0_77 = arith.constant 0 : index
    %c5 = arith.constant 5 : index
    %c0_78 = arith.constant 0 : index
    %83 = vector.load %arg7[%c0_77, %c5, %c0_78] : memref<2x9x8xf32, #tpu.memory_space<vmem>>, vector<1x1x8xf32>
    %84 = vector.shape_cast %83 : vector<1x1x8xf32> to vector<1x8xf32>
    %85 = vector.shape_cast %84 : vector<1x8xf32> to vector<1x1x8xf32>
    %86 = vector.broadcast %85 : vector<1x1x8xf32> to vector<8x16x8xf32>
    %87 = arith.mulf %82, %86 : vector<8x16x8xf32>
    %88 = arith.addf %80, %87 : vector<8x16x8xf32>
    %c0_79 = arith.constant 0 : index
    %c2_80 = arith.constant 2 : index
    %c0_81 = arith.constant 0 : index
    %c0_82 = arith.constant 0 : index
    %89 = vector.load %arg12[%c0_79, %c2_80, %c0_81, %c0_82] : memref<2x10x18x8xf32, #tpu.memory_space<vmem>>, vector<1x8x16x8xf32>
    %90 = vector.shape_cast %89 : vector<1x8x16x8xf32> to vector<8x16x8xf32>
    %c0_83 = arith.constant 0 : index
    %c6 = arith.constant 6 : index
    %c0_84 = arith.constant 0 : index
    %91 = vector.load %arg7[%c0_83, %c6, %c0_84] : memref<2x9x8xf32, #tpu.memory_space<vmem>>, vector<1x1x8xf32>
    %92 = vector.shape_cast %91 : vector<1x1x8xf32> to vector<1x8xf32>
    %93 = vector.shape_cast %92 : vector<1x8xf32> to vector<1x1x8xf32>
    %94 = vector.broadcast %93 : vector<1x1x8xf32> to vector<8x16x8xf32>
    %95 = arith.mulf %90, %94 : vector<8x16x8xf32>
    %96 = arith.addf %88, %95 : vector<8x16x8xf32>
    %c0_85 = arith.constant 0 : index
    %c2_86 = arith.constant 2 : index
    %c1_87 = arith.constant 1 : index
    %c0_88 = arith.constant 0 : index
    %97 = vector.load %arg12[%c0_85, %c2_86, %c1_87, %c0_88] : memref<2x10x18x8xf32, #tpu.memory_space<vmem>>, vector<1x8x16x8xf32>
    %98 = vector.shape_cast %97 : vector<1x8x16x8xf32> to vector<8x16x8xf32>
    %c0_89 = arith.constant 0 : index
    %c7_90 = arith.constant 7 : index
    %c0_91 = arith.constant 0 : index
    %99 = vector.load %arg7[%c0_89, %c7_90, %c0_91] : memref<2x9x8xf32, #tpu.memory_space<vmem>>, vector<1x1x8xf32>
    %100 = vector.shape_cast %99 : vector<1x1x8xf32> to vector<1x8xf32>
    %101 = vector.shape_cast %100 : vector<1x8xf32> to vector<1x1x8xf32>
    %102 = vector.broadcast %101 : vector<1x1x8xf32> to vector<8x16x8xf32>
    %103 = arith.mulf %98, %102 : vector<8x16x8xf32>
    %104 = arith.addf %96, %103 : vector<8x16x8xf32>
    %c0_92 = arith.constant 0 : index
    %c2_93 = arith.constant 2 : index
    %c2_94 = arith.constant 2 : index
    %c0_95 = arith.constant 0 : index
    %105 = vector.load %arg12[%c0_92, %c2_93, %c2_94, %c0_95] : memref<2x10x18x8xf32, #tpu.memory_space<vmem>>, vector<1x8x16x8xf32>
    %106 = vector.shape_cast %105 : vector<1x8x16x8xf32> to vector<8x16x8xf32>
    %c0_96 = arith.constant 0 : index
    %c8 = arith.constant 8 : index
    %c0_97 = arith.constant 0 : index
    %107 = vector.load %arg7[%c0_96, %c8, %c0_97] : memref<2x9x8xf32, #tpu.memory_space<vmem>>, vector<1x1x8xf32>
    %108 = vector.shape_cast %107 : vector<1x1x8xf32> to vector<1x8xf32>
    %109 = vector.shape_cast %108 : vector<1x8xf32> to vector<1x1x8xf32>
    %110 = vector.broadcast %109 : vector<1x1x8xf32> to vector<8x16x8xf32>
    %111 = arith.mulf %106, %110 : vector<8x16x8xf32>
    %112 = arith.addf %104, %111 : vector<8x16x8xf32>
    %c0_98 = arith.constant 0 : index
    %c0_99 = arith.constant 0 : index
    %c0_100 = arith.constant 0 : index
    %113 = vector.load %arg8[%c0_98, %c0_99, %c0_100] : memref<2x1x8xf32, #tpu.memory_space<vmem>>, vector<1x1x8xf32>
    %114 = vector.shape_cast %113 : vector<1x1x8xf32> to vector<1x8xf32>
    %115 = vector.shape_cast %114 : vector<1x8xf32> to vector<1x1x8xf32>
    %116 = vector.broadcast %115 : vector<1x1x8xf32> to vector<8x16x8xf32>
    %117 = arith.addf %112, %116 : vector<8x16x8xf32>
    %c1_101 = arith.constant 1 : index
    %c0_102 = arith.constant 0 : index
    %c0_103 = arith.constant 0 : index
    %c0_104 = arith.constant 0 : index
    %118 = vector.load %arg12[%c1_101, %c0_102, %c0_103, %c0_104] : memref<2x10x18x8xf32, #tpu.memory_space<vmem>>, vector<1x8x16x8xf32>
    %119 = vector.shape_cast %118 : vector<1x8x16x8xf32> to vector<8x16x8xf32>
    %c1_105 = arith.constant 1 : index
    %c0_106 = arith.constant 0 : index
    %c0_107 = arith.constant 0 : index
    %120 = vector.load %arg7[%c1_105, %c0_106, %c0_107] : memref<2x9x8xf32, #tpu.memory_space<vmem>>, vector<1x1x8xf32>
    %121 = vector.shape_cast %120 : vector<1x1x8xf32> to vector<1x8xf32>
    %122 = vector.shape_cast %121 : vector<1x8xf32> to vector<1x1x8xf32>
    %123 = vector.broadcast %122 : vector<1x1x8xf32> to vector<8x16x8xf32>
    %124 = arith.mulf %119, %123 : vector<8x16x8xf32>
    %c1_108 = arith.constant 1 : index
    %c0_109 = arith.constant 0 : index
    %c1_110 = arith.constant 1 : index
    %c0_111 = arith.constant 0 : index
    %125 = vector.load %arg12[%c1_108, %c0_109, %c1_110, %c0_111] : memref<2x10x18x8xf32, #tpu.memory_space<vmem>>, vector<1x8x16x8xf32>
    %126 = vector.shape_cast %125 : vector<1x8x16x8xf32> to vector<8x16x8xf32>
    %c1_112 = arith.constant 1 : index
    %c1_113 = arith.constant 1 : index
    %c0_114 = arith.constant 0 : index
    %127 = vector.load %arg7[%c1_112, %c1_113, %c0_114] : memref<2x9x8xf32, #tpu.memory_space<vmem>>, vector<1x1x8xf32>
    %128 = vector.shape_cast %127 : vector<1x1x8xf32> to vector<1x8xf32>
    %129 = vector.shape_cast %128 : vector<1x8xf32> to vector<1x1x8xf32>
    %130 = vector.broadcast %129 : vector<1x1x8xf32> to vector<8x16x8xf32>
    %131 = arith.mulf %126, %130 : vector<8x16x8xf32>
    %132 = arith.addf %124, %131 : vector<8x16x8xf32>
    %c1_115 = arith.constant 1 : index
    %c0_116 = arith.constant 0 : index
    %c2_117 = arith.constant 2 : index
    %c0_118 = arith.constant 0 : index
    %133 = vector.load %arg12[%c1_115, %c0_116, %c2_117, %c0_118] : memref<2x10x18x8xf32, #tpu.memory_space<vmem>>, vector<1x8x16x8xf32>
    %134 = vector.shape_cast %133 : vector<1x8x16x8xf32> to vector<8x16x8xf32>
    %c1_119 = arith.constant 1 : index
    %c2_120 = arith.constant 2 : index
    %c0_121 = arith.constant 0 : index
    %135 = vector.load %arg7[%c1_119, %c2_120, %c0_121] : memref<2x9x8xf32, #tpu.memory_space<vmem>>, vector<1x1x8xf32>
    %136 = vector.shape_cast %135 : vector<1x1x8xf32> to vector<1x8xf32>
    %137 = vector.shape_cast %136 : vector<1x8xf32> to vector<1x1x8xf32>
    %138 = vector.broadcast %137 : vector<1x1x8xf32> to vector<8x16x8xf32>
    %139 = arith.mulf %134, %138 : vector<8x16x8xf32>
    %140 = arith.addf %132, %139 : vector<8x16x8xf32>
    %c1_122 = arith.constant 1 : index
    %c1_123 = arith.constant 1 : index
    %c0_124 = arith.constant 0 : index
    %c0_125 = arith.constant 0 : index
    %141 = vector.load %arg12[%c1_122, %c1_123, %c0_124, %c0_125] : memref<2x10x18x8xf32, #tpu.memory_space<vmem>>, vector<1x8x16x8xf32>
    %142 = vector.shape_cast %141 : vector<1x8x16x8xf32> to vector<8x16x8xf32>
    %c1_126 = arith.constant 1 : index
    %c3_127 = arith.constant 3 : index
    %c0_128 = arith.constant 0 : index
    %143 = vector.load %arg7[%c1_126, %c3_127, %c0_128] : memref<2x9x8xf32, #tpu.memory_space<vmem>>, vector<1x1x8xf32>
    %144 = vector.shape_cast %143 : vector<1x1x8xf32> to vector<1x8xf32>
    %145 = vector.shape_cast %144 : vector<1x8xf32> to vector<1x1x8xf32>
    %146 = vector.broadcast %145 : vector<1x1x8xf32> to vector<8x16x8xf32>
    %147 = arith.mulf %142, %146 : vector<8x16x8xf32>
    %148 = arith.addf %140, %147 : vector<8x16x8xf32>
    %c1_129 = arith.constant 1 : index
    %c1_130 = arith.constant 1 : index
    %c1_131 = arith.constant 1 : index
    %c0_132 = arith.constant 0 : index
    %149 = vector.load %arg12[%c1_129, %c1_130, %c1_131, %c0_132] : memref<2x10x18x8xf32, #tpu.memory_space<vmem>>, vector<1x8x16x8xf32>
    %150 = vector.shape_cast %149 : vector<1x8x16x8xf32> to vector<8x16x8xf32>
    %c1_133 = arith.constant 1 : index
    %c4_134 = arith.constant 4 : index
    %c0_135 = arith.constant 0 : index
    %151 = vector.load %arg7[%c1_133, %c4_134, %c0_135] : memref<2x9x8xf32, #tpu.memory_space<vmem>>, vector<1x1x8xf32>
    %152 = vector.shape_cast %151 : vector<1x1x8xf32> to vector<1x8xf32>
    %153 = vector.shape_cast %152 : vector<1x8xf32> to vector<1x1x8xf32>
    %154 = vector.broadcast %153 : vector<1x1x8xf32> to vector<8x16x8xf32>
    %155 = arith.mulf %150, %154 : vector<8x16x8xf32>
    %156 = arith.addf %148, %155 : vector<8x16x8xf32>
    %c1_136 = arith.constant 1 : index
    %c1_137 = arith.constant 1 : index
    %c2_138 = arith.constant 2 : index
    %c0_139 = arith.constant 0 : index
    %157 = vector.load %arg12[%c1_136, %c1_137, %c2_138, %c0_139] : memref<2x10x18x8xf32, #tpu.memory_space<vmem>>, vector<1x8x16x8xf32>
    %158 = vector.shape_cast %157 : vector<1x8x16x8xf32> to vector<8x16x8xf32>
    %c1_140 = arith.constant 1 : index
    %c5_141 = arith.constant 5 : index
    %c0_142 = arith.constant 0 : index
    %159 = vector.load %arg7[%c1_140, %c5_141, %c0_142] : memref<2x9x8xf32, #tpu.memory_space<vmem>>, vector<1x1x8xf32>
    %160 = vector.shape_cast %159 : vector<1x1x8xf32> to vector<1x8xf32>
    %161 = vector.shape_cast %160 : vector<1x8xf32> to vector<1x1x8xf32>
    %162 = vector.broadcast %161 : vector<1x1x8xf32> to vector<8x16x8xf32>
    %163 = arith.mulf %158, %162 : vector<8x16x8xf32>
    %164 = arith.addf %156, %163 : vector<8x16x8xf32>
    %c1_143 = arith.constant 1 : index
    %c2_144 = arith.constant 2 : index
    %c0_145 = arith.constant 0 : index
    %c0_146 = arith.constant 0 : index
    %165 = vector.load %arg12[%c1_143, %c2_144, %c0_145, %c0_146] : memref<2x10x18x8xf32, #tpu.memory_space<vmem>>, vector<1x8x16x8xf32>
    %166 = vector.shape_cast %165 : vector<1x8x16x8xf32> to vector<8x16x8xf32>
    %c1_147 = arith.constant 1 : index
    %c6_148 = arith.constant 6 : index
    %c0_149 = arith.constant 0 : index
    %167 = vector.load %arg7[%c1_147, %c6_148, %c0_149] : memref<2x9x8xf32, #tpu.memory_space<vmem>>, vector<1x1x8xf32>
    %168 = vector.shape_cast %167 : vector<1x1x8xf32> to vector<1x8xf32>
    %169 = vector.shape_cast %168 : vector<1x8xf32> to vector<1x1x8xf32>
    %170 = vector.broadcast %169 : vector<1x1x8xf32> to vector<8x16x8xf32>
    %171 = arith.mulf %166, %170 : vector<8x16x8xf32>
    %172 = arith.addf %164, %171 : vector<8x16x8xf32>
    %c1_150 = arith.constant 1 : index
    %c2_151 = arith.constant 2 : index
    %c1_152 = arith.constant 1 : index
    %c0_153 = arith.constant 0 : index
    %173 = vector.load %arg12[%c1_150, %c2_151, %c1_152, %c0_153] : memref<2x10x18x8xf32, #tpu.memory_space<vmem>>, vector<1x8x16x8xf32>
    %174 = vector.shape_cast %173 : vector<1x8x16x8xf32> to vector<8x16x8xf32>
    %c1_154 = arith.constant 1 : index
    %c7_155 = arith.constant 7 : index
    %c0_156 = arith.constant 0 : index
    %175 = vector.load %arg7[%c1_154, %c7_155, %c0_156] : memref<2x9x8xf32, #tpu.memory_space<vmem>>, vector<1x1x8xf32>
    %176 = vector.shape_cast %175 : vector<1x1x8xf32> to vector<1x8xf32>
    %177 = vector.shape_cast %176 : vector<1x8xf32> to vector<1x1x8xf32>
    %178 = vector.broadcast %177 : vector<1x1x8xf32> to vector<8x16x8xf32>
    %179 = arith.mulf %174, %178 : vector<8x16x8xf32>
    %180 = arith.addf %172, %179 : vector<8x16x8xf32>
    %c1_157 = arith.constant 1 : index
    %c2_158 = arith.constant 2 : index
    %c2_159 = arith.constant 2 : index
    %c0_160 = arith.constant 0 : index
    %181 = vector.load %arg12[%c1_157, %c2_158, %c2_159, %c0_160] : memref<2x10x18x8xf32, #tpu.memory_space<vmem>>, vector<1x8x16x8xf32>
    %182 = vector.shape_cast %181 : vector<1x8x16x8xf32> to vector<8x16x8xf32>
    %c1_161 = arith.constant 1 : index
    %c8_162 = arith.constant 8 : index
    %c0_163 = arith.constant 0 : index
    %183 = vector.load %arg7[%c1_161, %c8_162, %c0_163] : memref<2x9x8xf32, #tpu.memory_space<vmem>>, vector<1x1x8xf32>
    %184 = vector.shape_cast %183 : vector<1x1x8xf32> to vector<1x8xf32>
    %185 = vector.shape_cast %184 : vector<1x8xf32> to vector<1x1x8xf32>
    %186 = vector.broadcast %185 : vector<1x1x8xf32> to vector<8x16x8xf32>
    %187 = arith.mulf %182, %186 : vector<8x16x8xf32>
    %188 = arith.addf %180, %187 : vector<8x16x8xf32>
    %c1_164 = arith.constant 1 : index
    %c0_165 = arith.constant 0 : index
    %c0_166 = arith.constant 0 : index
    %189 = vector.load %arg8[%c1_164, %c0_165, %c0_166] : memref<2x1x8xf32, #tpu.memory_space<vmem>>, vector<1x1x8xf32>
    %190 = vector.shape_cast %189 : vector<1x1x8xf32> to vector<1x8xf32>
    %191 = vector.shape_cast %190 : vector<1x8xf32> to vector<1x1x8xf32>
    %192 = vector.broadcast %191 : vector<1x1x8xf32> to vector<8x16x8xf32>
    %193 = arith.addf %188, %192 : vector<8x16x8xf32>
    %cst_167 = arith.constant 5.000000e-01 : f32
    %194 = vector.broadcast %cst_167 : f32 to vector<8x16x8xf32>
    %195 = arith.mulf %194, %117 : vector<8x16x8xf32>
    %cst_168 = arith.constant 4.471500e-02 : f32
    %196 = vector.broadcast %cst_168 : f32 to vector<8x16x8xf32>
    %197 = arith.mulf %196, %117 : vector<8x16x8xf32>
    %198 = arith.mulf %197, %117 : vector<8x16x8xf32>
    %199 = arith.mulf %198, %117 : vector<8x16x8xf32>
    %200 = arith.addf %117, %199 : vector<8x16x8xf32>
    %cst_169 = arith.constant 0.797884583 : f32
    %201 = vector.broadcast %cst_169 : f32 to vector<8x16x8xf32>
    %202 = arith.mulf %201, %200 : vector<8x16x8xf32>
    %203 = math.tanh %202 : vector<8x16x8xf32>
    %cst_170 = arith.constant 1.000000e+00 : f32
    %204 = vector.broadcast %cst_170 : f32 to vector<8x16x8xf32>
    %205 = arith.addf %204, %203 : vector<8x16x8xf32>
    %206 = arith.mulf %195, %205 : vector<8x16x8xf32>
    %207 = arith.mulf %206, %193 : vector<8x16x8xf32>
    %208 = vector.shape_cast %207 : vector<8x16x8xf32> to vector<128x8xf32>
    %c0_171 = arith.constant 0 : index
    %c0_172 = arith.constant 0 : index
    %209 = vector.load %arg9[%c0_171, %c0_172] : memref<8x4xf32, #tpu.memory_space<vmem>>, vector<8x4xf32>
    %cst_173 = arith.constant dense<0.000000e+00> : vector<128x4xf32>
    %210 = tpu.matmul %208, %209, %cst_173 {dimension_numbers = #tpu.dot_dimension_numbers<[1], [0], [0], [1], [0, 0, 1, 1], [], []>} : vector<128x8xf32>, vector<8x4xf32>, vector<128x4xf32> -> vector<128x4xf32>
    %c0_174 = arith.constant 0 : index
    %c0_175 = arith.constant 0 : index
    %211 = vector.load %arg10[%c0_174, %c0_175] : memref<1x4xf32, #tpu.memory_space<vmem>>, vector<1x4xf32>
    %212 = vector.broadcast %211 : vector<1x4xf32> to vector<128x4xf32>
    %213 = arith.addf %210, %212 : vector<128x4xf32>
    %214 = vector.shape_cast %213 : vector<128x4xf32> to vector<8x16x4xf32>
    %c0_176 = arith.constant 0 : index
    %c0_177 = arith.constant 0 : index
    %c0_178 = arith.constant 0 : index
    %c0_179 = arith.constant 0 : index
    %215 = vector.load %arg11[%c0_176, %c0_177, %c0_178, %c0_179] : memref<1x8x16x4xf32, #tpu.memory_space<vmem>>, vector<1x8x16x4xf32>
    %216 = vector.shape_cast %215 : vector<1x8x16x4xf32> to vector<8x16x4xf32>
    %217 = vector.shape_cast %214 : vector<8x16x4xf32> to vector<1x8x16x4xf32>
    tpu.vector_store %arg11[%c0_176, %c0_177, %c0_178, %c0_179], %217 {strides = array<i32>} : memref<1x8x16x4xf32, #tpu.memory_space<vmem>>, vector<1x8x16x4xf32>,
    return
  }
  func.func @transform_0(%arg0: i32, %arg1: i32) -> (i32, i32, i32, i32) {
    %c0_i32 = arith.constant 0 : i32
    %c0_i32_0 = arith.constant 0 : i32
    %c0_i32_1 = arith.constant 0 : i32
    return %arg0, %arg1, %c0_i32, %c0_i32_0 : i32, i32, i32, i32
  }
  func.func @transform_1(%arg0: i32, %arg1: i32) -> (i32, i32, i32, i32) {
    %c1_i32 = arith.constant 1 : i32
    %0 = arith.muli %arg1, %c1_i32 : i32
    %c1_i32_0 = arith.constant 1 : i32
    %1 = arith.subi %0, %c1_i32_0 : i32
    %c0_i32 = arith.constant 0 : i32
    %2 = arith.maxsi %1, %c0_i32 : i32
    %c0_i32_1 = arith.constant 0 : i32
    %c0_i32_2 = arith.constant 0 : i32
    %c0_i32_3 = arith.constant 0 : i32
    return %arg0, %2, %c0_i32_1, %c0_i32_2 : i32, i32, i32, i32
  }
  func.func @transform_2(%arg0: i32, %arg1: i32) -> (i32, i32, i32, i32) {
    %c1_i32 = arith.constant 1 : i32
    %0 = arith.addi %arg1, %c1_i32 : i32
    %c1_i32_0 = arith.constant 1 : i32
    %1 = arith.muli %0, %c1_i32_0 : i32
    %c1_i32_1 = arith.constant 1 : i32
    %2 = arith.minsi %1, %c1_i32_1 : i32
    %c0_i32 = arith.constant 0 : i32
    %c0_i32_2 = arith.constant 0 : i32
    %c0_i32_3 = arith.constant 0 : i32
    return %arg0, %2, %c0_i32, %c0_i32_2 : i32, i32, i32, i32
  }
  func.func @transform_3(%arg0: i32, %arg1: i32) -> (i32, i32, i32) {
    %c0_i32 = arith.constant 0 : i32
    %c0_i32_0 = arith.constant 0 : i32
    %c0_i32_1 = arith.constant 0 : i32
    %c0_i32_2 = arith.constant 0 : i32
    return %c0_i32, %c0_i32_0, %c0_i32_1 : i32, i32, i32
  }
  func.func @transform_4(%arg0: i32, %arg1: i32) -> (i32, i32, i32) {
    %c0_i32 = arith.constant 0 : i32
    %c0_i32_0 = arith.constant 0 : i32
    %c0_i32_1 = arith.constant 0 : i32
    %c0_i32_2 = arith.constant 0 : i32
    return %c0_i32, %c0_i32_0, %c0_i32_1 : i32, i32, i32
  }
  func.func @transform_5(%arg0: i32, %arg1: i32) -> (i32, i32, i32) {
    %c0_i32 = arith.constant 0 : i32
    %c0_i32_0 = arith.constant 0 : i32
    %c0_i32_1 = arith.constant 0 : i32
    %c0_i32_2 = arith.constant 0 : i32
    return %c0_i32, %c0_i32_0, %c0_i32_1 : i32, i32, i32
  }
  func.func @transform_6(%arg0: i32, %arg1: i32) -> (i32, i32, i32) {
    %c0_i32 = arith.constant 0 : i32
    %c0_i32_0 = arith.constant 0 : i32
    %c0_i32_1 = arith.constant 0 : i32
    %c0_i32_2 = arith.constant 0 : i32
    return %c0_i32, %c0_i32_0, %c0_i32_1 : i32, i32, i32
  }
  func.func @transform_7(%arg0: i32, %arg1: i32) -> (i32, i32) {
    %c0_i32 = arith.constant 0 : i32
    %c0_i32_0 = arith.constant 0 : i32
    %c0_i32_1 = arith.constant 0 : i32
    return %c0_i32, %c0_i32_0 : i32, i32
  }
  func.func @transform_8(%arg0: i32, %arg1: i32) -> (i32, i32) {
    %c0_i32 = arith.constant 0 : i32
    %c0_i32_0 = arith.constant 0 : i32
    %c0_i32_1 = arith.constant 0 : i32
    return %c0_i32, %c0_i32_0 : i32, i32
  }
  func.func @transform_9(%arg0: i32, %arg1: i32) -> (i32, i32, i32, i32) {
    %c0_i32 = arith.constant 0 : i32
    %c0_i32_0 = arith.constant 0 : i32
    %c0_i32_1 = arith.constant 0 : i32
    return %arg0, %arg1, %c0_i32, %c0_i32_0 : i32, i32, i32, i32
  }
}

</mosaic_0001>

<bundles_post_ra>
// kernel: tpu_custom_call.1
= control target key start
LH: loop header
LB: loop body
LE: loop exit
PB: predicated region body
PF: predicated region fallthrough
CT: control target
= control target key end

     0   :  { %s2994_s30 = smov 0   ;;  %s2996_s10 = smov 0   ;;  %s4351_s0 = inlined_call_operand.vmem [shape: f32[2,16,16,4], index: 0, kind: input, shape index: {}]   ;;  %s4352_s1 = inlined_call_operand.vmem [shape: f32[2,16,16,4], index: 1, kind: input, shape index: {}]   ;;  %s4353_s2 = inlined_call_operand.vmem [shape: f32[2,16,16,4], index: 2, kind: input, shape index: {}]   ;;  %s4354_s3 = inlined_call_operand.vmem [shape: f32[2,4,8], index: 3, kind: input, shape index: {}]   ;;  %s4355_s4 = inlined_call_operand.vmem [shape: f32[2,1,8], index: 4, kind: input, shape index: {}]   ;;  %s4356_s5 = inlined_call_operand.vmem [shape: f32[2,9,8], index: 5, kind: input, shape index: {}]   ;;  %s4357_s6 = inlined_call_operand.vmem [shape: f32[2,1,8], index: 6, kind: input, shape index: {}]   ;;  %s4358_s7 = inlined_call_operand.vmem [shape: f32[8,4], index: 7, kind: input, shape index: {}]   ;;  %s4359_s8 = inlined_call_operand.vmem [shape: f32[1,4], index: 8, kind: input, shape index: {}]   ;;  %s4360_s9 = inlined_call_operand.vmem [shape: f32[2,16,16,4], index: 9, kind: output, shape index: {}]  }
   0x1   :  { %4386 = sst [smem:[#allocation13_spill]] %s4351_s0  ;;  %s2998_s11 = smov 0  }
   0x2   :  { %s3000_s12 = smov 0   ;;  %s3002_s13 = smov 0  }
   0x3 LB: > { %s28_s14 = sadd.s32 1, %s2931_s11  ;;  %s31_s15 = sadd.s32 1, %s2935_s12  ;;  %s2939_s13 = sphi %s3002_s13, %s19_s13   ;;  %s2935_s12 = sphi %s3000_s12, %s4423_s12   ;;  %s2931_s11 = sphi %s2998_s11, %s4422_s11   ;;  %s2927_s10 = sphi %s2996_s10, %s4421_s10   ;;  %s2923_s30 = sphi %s2994_s30, %s4420_s30  }
   0x4   : > { %p29_p0 = scmp.ge.s32.totalorder %s28_s14, 2  ;;  %p2538_p1 = scmp.ge.s32.totalorder %s2939_s13, 1 }
   0x5   : > { %p369_p2 = scmp.lt.s32.totalorder %s2939_s13, 5 }
   0x6   : > { %s4425_s14 = smov (%p29_p0, %s28_s14), 0  ;;  %s4427_s15 = smov (!%p29_p0, %s31_s15), %s2935_s12 }
   0x7   : > { %p370_p3 = pnand %p2538_p1, %p369_p2  ;;  %p33_p4 = scmp.ge.s32.totalorder %s4427_s15, 2 }
   0x9   : > { %s4429_s15 = smov (%p33_p4, %s4427_s15), 0  ;;  %373 = sbr.rel (%p370_p3) target bundleno = 735 (0x2df), region = 56 }
  0x10   : > { %v518_v0 = vld [vmem:[%s4354_s3] sm:$0xf]  ;;  %vm587_vm0 = vcmask 1043456   ;;  %s2539_s18 = sshll.u32 %s2923_s30, 3  ;;  %p442_p5 = scmp.lt.s32.totalorder %s2927_s10, 1  ;;  %vm526_vm1 = vcmask 31744  }
  0x11   : > { %2804 = vmatprep.subr.msk.mxu1 %vm587_vm0, %v518_v0  ;;  %p444_p6 = scmp.lt.s32.totalorder %s2539_s18, 15  ;;  %v2580_v1 = vld [vmem:[%s4354_s3 + $0x4] sm:$0xf]  ;;  %s469_s21 = sadd.s32 1, %s2923_s30  ;;  %2714 = vmatprep.subr.msk.mxu0 %vm587_vm0, %v518_v0  ;;  %vm976_vm2 = vcmask 57344   ;;  %v2941_v22 = vmov 0.0  }
  0x12   : > { %2805 = vmatpush3.msk.msra.mxu1 %vm587_vm0, %v518_v0  ;;  %s4431_s10 = smov (!%p442_p5, %s2927_s10), 1  ;;  %2715 = vmatpush3.msk.msra.mxu0 %vm587_vm0, %v518_v0  ;;  %p470_p7 = scmp.lt.s32.totalorder %s469_s21, 1  ;;  %977 = vst.msk [vmem:[#allocation2] sm:$0x1] %vm976_vm2, %v2941_v22  ;;  %978 = vst.msk [vmem:[#allocation2 + $0x18] sm:$0x1] %vm976_vm2, %v2941_v22 }
  0x13   : > { %s4433_s18 = smov (!%p444_p6, %s2539_s18), 15  ;;  %2746 = vmatprep.subr.msk.mxu1 %vm587_vm0, %v2580_v1  ;;  %s3039_s22 = sshll.u32 %s4431_s10, 5  ;;  %979 = vst.msk [vmem:[#allocation2 + $0x30] sm:$0x1] %vm976_vm2, %v2941_v22  ;;  %980 = vst.msk [vmem:[#allocation2 + $0x48] sm:$0x1] %vm976_vm2, %v2941_v22 }
  0x14   : > { %s2540_s23 = sshll.u32 %s4433_s18, 1  ;;  %s2543_s24 = sadd.s32 4294967295, %s2923_s30  ;;  %981 = vst.msk [vmem:[#allocation2 + $0x60] sm:$0x1] %vm976_vm2, %v2941_v22  ;;  %982 = vst.msk [vmem:[#allocation2 + $0x78] sm:$0x1] %vm976_vm2, %v2941_v22 }
  0x15   : > { %s448_s25 = sadd.s32 %s3039_s22, %s2540_s23  ;;  %p453_p8 = scmp.gt.s32.totalorder %s2543_s24, 0  ;;  %983 = vst.msk [vmem:[#allocation2 + $0x90] sm:$0x1] %vm976_vm2, %v2941_v22  ;;  %984 = vst.msk [vmem:[#allocation2 + $0xa8] sm:$0x1] %vm976_vm2, %v2941_v22  ;;  %vm756_vm3 = vcmask 64512  }
  0x16   : > { %s2542_s26 = sshll.u32 %s448_s25, 3  ;;  %s4387_s0 = sld [smem:[#allocation13_spill]]  ;;  %985 = vst.msk [vmem:[#allocation2 + $0xc0] sm:$0x1] %vm976_vm2, %v2941_v22  ;;  %986 = vst.msk [vmem:[#allocation2 + $0xd8] sm:$0x1] %vm976_vm2, %v2941_v22 }
  0x17   : > { %s3051_s10 = scalar_lea.vmem %s4360_s9, %s2542_s26  ;;  %s4435_s21 = smov (!%p470_p7, %s469_s21), 1  ;;  %987 = vst.msk [vmem:[#allocation2 + $0xf0] sm:$0x1] %vm976_vm2, %v2941_v22  ;;  %988 = vst.msk [vmem:[#allocation2 + $0x108] sm:$0x1] %vm976_vm2, %v2941_v22 }
  0x18   : > { %s4437_s24 = smov (!%p453_p8, %s2543_s24), 0  ;;  %s2548_s18 = sshll.u32 %s4435_s21, 3  ;;  %989 = vst.msk [vmem:[#allocation2 + $0x120] sm:$0x1] %vm976_vm2, %v2941_v22  ;;  %990 = vst.msk [vmem:[#allocation2 + $0x138] sm:$0x1] %vm976_vm2, %v2941_v22 }
  0x19   : > { %p475_p9 = scmp.lt.s32.totalorder %s2548_s18, 15  ;;  %s2544_s19 = sshll.u32 %s4437_s24, 3  ;;  %991 = vst.msk [vmem:[#allocation2 + $0x150] sm:$0x1] %vm976_vm2, %v2941_v22  ;;  %992 = vst.msk [vmem:[#allocation2 + $0x168] sm:$0x1] %vm976_vm2, %v2941_v22 }
  0x1a   : > { %p458_p10 = scmp.lt.s32.totalorder %s2544_s19, 15  ;;  %993 = vst.msk [vmem:[#allocation2 + $0x180] sm:$0x1] %vm976_vm2, %v2941_v22  ;;  %994 = vst.msk [vmem:[#allocation2 + $0x198] sm:$0x1] %vm976_vm2, %v2941_v22  ;;  %p2604_p11 = scmp.ne.s32.totalorder %s2923_s30, 0 }
  0x1b   : > { %s4439_s18 = smov (!%p475_p9, %s2548_s18), 15  ;;  %995 = vst.msk [vmem:[#allocation2 + $0x1b0] sm:$0x1] %vm976_vm2, %v2941_v22  ;;  %996 = vst.msk [vmem:[#allocation2 + $0x1c8] sm:$0x1] %vm976_vm2, %v2941_v22  ;;  %vm1023_vm4 = vcmask (!%p2604_p11), 58368  }
  0x1c   : > { %s3046_s29 = scalar_lea.vmem %s4387_s0, %s2542_s26  ;;  %s4441_s19 = smov (!%p458_p10, %s2544_s19), 15  ;;  %997 = vst.msk [vmem:[#allocation2 + $0x11] sm:$0x1] %vm976_vm2, %v2941_v22  ;;  %998 = vst.msk [vmem:[#allocation2 + $0x29] sm:$0x1] %vm976_vm2, %v2941_v22 }
  0x1d   : > { %v3054_v2 = vld [vmem:[%s3046_s29 + $0x50] sm:$0xff]  ;;  %v3057_v3 = vld [vmem:[%s3046_s29 + $0x58] sm:$0xff]  ;;  %v3060_v4 = vld [vmem:[%s3046_s29 + $0x60] sm:$0xff]  ;;  %s2549_s20 = sshll.u32 %s4439_s18, 1  ;;  %s2545_s23 = sshll.u32 %s4441_s19, 1 }
  0x1e   : > { %2734 = vmatprep.mubr.msk.f32.mxu1 %vm526_vm1, %v3054_v2  ;;  %v515_v5 = vld [vmem:[%s3046_s29 + $0x68] sm:$0xff]  ;;  %v516_v6 = vld [vmem:[%s3046_s29 + $0x70] sm:$0xff]  ;;  %v517_v7 = vld [vmem:[%s3046_s29 + $0x78] sm:$0xff]  ;;  %s479_s21 = sadd.s32 %s2549_s20, %s3039_s22  ;;  %s462_s26 = sadd.s32 %s2545_s23, %s3039_s22  ;;  %999 = vst.msk [vmem:[#allocation2 + $0x41] sm:$0x1] %vm976_vm2, %v2941_v22 }
  0x1f   : > { %2735 = vmatmul.mubr.msk.f32.vlgmr.msra.gmra.mrb[0].mxu1 %vm526_vm1, %v3057_v3  ;;  %s2551_s25 = sshll.u32 %s479_s21, 3  ;;  %s2547_s16 = sshll.u32 %s462_s26, 3  ;;  %v502_v12 = vld [vmem:[%s3046_s29] sm:$0xff]  ;;  %v503_v13 = vld [vmem:[%s3046_s29 + $0x8] sm:$0xff]  ;;  %v504_v14 = vld [vmem:[%s3046_s29 + $0x10] sm:$0xff] }
  0x20   : > { %2747 = vmatpush3.msk.msra.mxu1 %vm587_vm0, %v2580_v1  ;;  %2737 = vmatprep.mubr.msk.f32.mxu1 %vm526_vm1, %v3060_v4  ;;  %s481_s28 = scalar_lea.vmem %s4353_s2, %s2551_s25  ;;  %s464_s18 = scalar_lea.vmem %s4352_s1, %s2547_s16  ;;  %v505_v15 = vld [vmem:[%s3046_s29 + $0x18] sm:$0xff]  ;;  %v506_v16 = vld [vmem:[%s3046_s29 + $0x20] sm:$0xff]  ;;  %v507_v17 = vld [vmem:[%s3046_s29 + $0x28] sm:$0xff]  ;;  %1000 = vst.msk [vmem:[#allocation2 + $0x59] sm:$0x1] %vm976_vm2, %v2941_v22 }
  0x21   : > { %v500_v8 = vld [vmem:[%s481_s28] sm:$0xff]  ;;  %v501_v9 = vld [vmem:[%s481_s28 + $0x8] sm:$0xff]  ;;  %v2556_v10 = vld [vmem:[%s464_s18 + $0x70] sm:$0xff]  ;;  %1001 = vst.msk [vmem:[#allocation2 + $0x71] sm:$0x1] %vm976_vm2, %v2941_v22 }
  0x22   : > { %v2557_v11 = vld [vmem:[%s464_s18 + $0x78] sm:$0xff]  ;;  %2716 = vmatprep.mubr.msk.f32.mxu0 %vm526_vm1, %v2556_v10  ;;  %v508_v18 = vld [vmem:[%s3046_s29 + $0x30] sm:$0xff]  ;;  %v510_v20 = vld [vmem:[%s3046_s29 + $0x40] sm:$0xff]  ;;  %1002 = vst.msk [vmem:[#allocation2 + $0x89] sm:$0x1] %vm976_vm2, %v2941_v22 }
  0x23   : > { %2738 = vmatmul.mubr.msk.f32.gmra.mrb[2].mxu1 %vm526_vm1, %v515_v5  ;;  %2717 = vmatmul.mubr.msk.f32.vlgmr.msra.gmra.mrb[0].mxu0 %vm526_vm1, %v2557_v11  ;;  %v509_v19 = vld [vmem:[%s3046_s29 + $0x38] sm:$0xff]  ;;  %v511_v21 = vld [vmem:[%s3046_s29 + $0x48] sm:$0xff]  ;;  %1003 = vst.msk [vmem:[#allocation2 + $0xa1] sm:$0x1] %vm976_vm2, %v2941_v22  ;;  %1004 = vst.msk [vmem:[#allocation2 + $0xb9] sm:$0x1] %vm976_vm2, %v2941_v22 }
  0x24   : > { %2740 = vmatprep.mubr.msk.f32.mxu1 %vm526_vm1, %v516_v6  ;;  %2719 = vmatprep.mubr.msk.f32.mxu0 %vm526_vm1, %v502_v12  ;;  %1005 = vst.msk [vmem:[#allocation2 + $0xd1] sm:$0x1] %vm976_vm2, %v2941_v22  ;;  %1006 = vst.msk [vmem:[#allocation2 + $0xe9] sm:$0x1] %vm976_vm2, %v2941_v22  ;;  %v3173_v23 = vld [vmem:[%s4355_s4] ss:$0 sm:$0xff] }
  0x25   : > { %1007 = vst.msk [vmem:[#allocation2 + $0x101] sm:$0x1] %vm976_vm2, %v2941_v22  ;;  %1008 = vst.msk [vmem:[#allocation2 + $0x119] sm:$0x1] %vm976_vm2, %v2941_v22  ;;  %v3193_v43 = vld [vmem:[%s4355_s4 + $0x1] ss:$0 sm:$0xff] }
  0x26   : > { %1009 = vst.msk [vmem:[#allocation2 + $0x131] sm:$0x1] %vm976_vm2, %v2941_v22  ;;  %1010 = vst.msk [vmem:[#allocation2 + $0x149] sm:$0x1] %vm976_vm2, %v2941_v22 }
  0x27   : > { %2741 = vmatmul.mubr.msk.f32.gmra.mrb[4].mxu1 %vm526_vm1, %v517_v7  ;;  %2720 = vmatmul.mubr.msk.f32.gmra.mrb[2].mxu0 %vm526_vm1, %v503_v13  ;;  %1011 = vst.msk [vmem:[#allocation2 + $0x161] sm:$0x1] %vm976_vm2, %v2941_v22  ;;  %1012 = vst.msk [vmem:[#allocation2 + $0x179] sm:$0x1] %vm976_vm2, %v2941_v22 }
  0x28   : > { %2743 = vmatprep.mubr.msk.f32.mxu1 %vm526_vm1, %v500_v8  ;;  %2722 = vmatprep.mubr.msk.f32.mxu0 %vm526_vm1, %v504_v14  ;;  %1013 = vst.msk [vmem:[#allocation2 + $0x191] sm:$0x1] %vm976_vm2, %v2941_v22  ;;  %1014 = vst.msk [vmem:[#allocation2 + $0x1a9] sm:$0x1] %vm976_vm2, %v2941_v22 }
  0x29   : > { %1015 = vst.msk [vmem:[#allocation2 + $0x1c1] sm:$0x1] %vm976_vm2, %v2941_v22  ;;  %1016 = vst.msk [vmem:[#allocation2 + $0x1d9] sm:$0x1] %vm976_vm2, %v2941_v22 }
  0x2b   : > { %2744 = vmatmul.mubr.msk.f32.gmra.mrb[6].mxu1 %vm526_vm1, %v501_v9  ;;  %2723 = vmatmul.mubr.msk.f32.gmra.mrb[4].mxu0 %vm526_vm1, %v505_v15 }
  0x2c   : > { %2748 = vmatprep.mubr.msk.f32.mxu1 %vm526_vm1, %v2556_v10  ;;  %2725 = vmatprep.mubr.msk.f32.mxu0 %vm526_vm1, %v506_v16 }
  0x2f   : > { %2749 = vmatmul.mubr.msk.f32.vlgmr.msra.gmra.mrb[8].mxu1 %vm526_vm1, %v2557_v11  ;;  %2726 = vmatmul.mubr.msk.f32.gmra.mrb[6].mxu0 %vm526_vm1, %v507_v17 }
  0x30   : > { %2751 = vmatprep.mubr.msk.f32.mxu1 %vm526_vm1, %v502_v12  ;;  %2728 = vmatprep.mubr.msk.f32.mxu0 %vm526_vm1, %v508_v18 }
  0x33   : > { %2752 = vmatmul.mubr.msk.f32.gmra.mrb[10].mxu1 %vm526_vm1, %v503_v13  ;;  %2729 = vmatmul.mubr.msk.f32.gmra.mrb[8].mxu0 %vm526_vm1, %v509_v19 }
  0x34   : > { %2754 = vmatprep.mubr.msk.f32.mxu1 %vm526_vm1, %v504_v14  ;;  %2731 = vmatprep.mubr.msk.f32.mxu0 %vm526_vm1, %v510_v20 }
  0x37   : > { %2755 = vmatmul.mubr.msk.f32.gmra.mrb[12].mxu1 %vm526_vm1, %v505_v15  ;;  %2732 = vmatmul.mubr.msk.f32.gmra.mrb[10].mxu0 %vm526_vm1, %v511_v21 }
  0x38   : > { %2757 = vmatprep.mubr.msk.f32.mxu1 %vm526_vm1, %v506_v16 }
  0x3b   : > { %2758 = vmatmul.mubr.msk.f32.gmra.mrb[14].mxu1 %vm526_vm1, %v507_v17 }
  0x3c   : > { %2760 = vmatprep.mubr.msk.f32.mxu1 %vm526_vm1, %v508_v18 }
  0x3f   : > { %2761 = vmatmul.mubr.msk.f32.gmra.mrb[16].mxu1 %vm526_vm1, %v509_v19 }
  0x40   : > { %2763 = vmatprep.mubr.msk.f32.mxu1 %vm526_vm1, %v510_v20 }
  0x43   : > { %2764 = vmatmul.mubr.msk.f32.gmra.mrb[18].mxu1 %vm526_vm1, %v511_v21 }
  0x44   : > { %2766 = vmatprep.mubr.msk.f32.mxu1 %vm526_vm1, %v3054_v2 }
  0x47   : > { %2767 = vmatmul.mubr.msk.f32.gmra.mrb[20].mxu1 %vm526_vm1, %v3057_v3 }
  0x48   : > { %2769 = vmatprep.mubr.msk.f32.mxu1 %vm526_vm1, %v3060_v4 }
  0x4b   : > { %2770 = vmatmul.mubr.msk.f32.gmra.mrb[22].mxu1 %vm526_vm1, %v515_v5 }
  0x4c   : > { %2772 = vmatprep.mubr.msk.f32.mxu1 %vm526_vm1, %v516_v6 }
  0x4f   : > { %2773 = vmatmul.mubr.msk.f32.gmra.mrb[24].mxu1 %vm526_vm1, %v517_v7 }
  0x50   : > { %2775 = vmatprep.mubr.msk.f32.mxu1 %vm526_vm1, %v500_v8 }
  0x53   : > { %2776 = vmatmul.mubr.msk.f32.gmra.mrb[26].mxu1 %vm526_vm1, %v501_v9 }
  0xf2   : > { %v2736_v24 = vpop.f32.mrb[0].mxu1 }
  0xf3   : > { %v723_v25 = vadd.f32 %v2736_v24, %v3173_v23  ;;  %v717_v26 = vpop.f32.mrb[1].mxu1 }
  0xf4   : > { %v718_v27 = vadd.f32 %v3173_v23, %v717_v26 }
  0xf5   : > { %770 = vst.msk [vmem:[#allocation2 + $0x99] sm:$0xff] %vm756_vm3, %v723_v25 }
  0xf6   : > { %769 = vst.msk [vmem:[#allocation2 + $0x91] sm:$0xff] %vm756_vm3, %v718_v27  ;;  %v2739_v28 = vpop.f32.mrb[2].mxu1  ;;  %v2718_v37 = vpop.f32.mrb[0].mxu0 }
  0xf7   : > { %v733_v29 = vadd.f32 %v2739_v28, %v3173_v23  ;;  %v727_v30 = vpop.f32.mrb[3].mxu1  ;;  %v663_v40 = vadd.f32 %v2718_v37, %v3173_v23  ;;  %v657_v41 = vpop.f32.mrb[1].mxu0 }
  0xf8   : > { %v728_v31 = vadd.f32 %v3173_v23, %v727_v30  ;;  %v658_v44 = vadd.f32 %v3173_v23, %v657_v41  ;;  %v2942_v41 = vmov (!%p2604_p11), 0.0  }
  0xf9   : > { %772 = vst.msk [vmem:[#allocation2 + $0xb1] sm:$0xff] %vm756_vm3, %v733_v29  ;;  %758 = vst.msk [vmem:[#allocation2 + $0x9] sm:$0xff] %vm756_vm3, %v663_v40 }
  0xfa   : > { %771 = vst.msk [vmem:[#allocation2 + $0xa9] sm:$0xff] %vm756_vm3, %v728_v31  ;;  %v2742_v32 = vpop.f32.mrb[4].mxu1  ;;  %757 = vst.msk [vmem:[#allocation2 + $0x1] sm:$0xff] %vm756_vm3, %v658_v44  ;;  %v2721_v46 = vpop.f32.mrb[2].mxu0 }
  0xfb   : > { %v743_v33 = vadd.f32 %v2742_v32, %v3173_v23  ;;  %v737_v34 = vpop.f32.mrb[5].mxu1  ;;  %v673_v49 = vadd.f32 %v2721_v46, %v3173_v23  ;;  %v667_v50 = vpop.f32.mrb[3].mxu0  ;;  %1021 = vst.msk [vmem:[#allocation2] sm:$0xff] (!%p2604_p11), %vm756_vm3, %v2942_v41  ;;  %1022 = vst.msk [vmem:[#allocation2 + $0x8] sm:$0xff] (!%p2604_p11), %vm756_vm3, %v2942_v41 }
  0xfc   : > { %v738_v35 = vadd.f32 %v3173_v23, %v737_v34  ;;  %v668_v52 = vadd.f32 %v3173_v23, %v667_v50  ;;  %1024 = vst.msk [vmem:[#allocation2 + $0x10] sm:$0x3] (!%p2604_p11), %vm1023_vm4, %v2942_v41 }
  0xfd   : > { %774 = vst.msk [vmem:[#allocation2 + $0xc9] sm:$0xff] %vm756_vm3, %v743_v33  ;;  %760 = vst.msk [vmem:[#allocation2 + $0x21] sm:$0xff] %vm756_vm3, %v673_v49 }
  0xfe   : > { %773 = vst.msk [vmem:[#allocation2 + $0xc1] sm:$0xff] %vm756_vm3, %v738_v35  ;;  %v2745_v36 = vpop.f32.mrb[6].mxu1  ;;  %759 = vst.msk [vmem:[#allocation2 + $0x19] sm:$0xff] %vm756_vm3, %v668_v52  ;;  %v2724_v54 = vpop.f32.mrb[4].mxu0 }
  0xff   : > { %v753_v38 = vadd.f32 %v2745_v36, %v3173_v23  ;;  %v747_v39 = vpop.f32.mrb[7].mxu1  ;;  %v683_v57 = vadd.f32 %v2724_v54, %v3173_v23  ;;  %v677_v58 = vpop.f32.mrb[5].mxu0 }
 0x100   : > { %v748_v42 = vadd.f32 %v3173_v23, %v747_v39  ;;  %v678_v60 = vadd.f32 %v3173_v23, %v677_v58 }
 0x101   : > { %776 = vst.msk [vmem:[#allocation2 + $0xe1] sm:$0xff] %vm756_vm3, %v753_v38  ;;  %762 = vst.msk [vmem:[#allocation2 + $0x39] sm:$0xff] %vm756_vm3, %v683_v57 }
 0x102   : > { %775 = vst.msk [vmem:[#allocation2 + $0xd9] sm:$0xff] %vm756_vm3, %v748_v42  ;;  %v2750_v45 = vpop.f32.mrb[8].mxu1  ;;  %761 = vst.msk [vmem:[#allocation2 + $0x31] sm:$0xff] %vm756_vm3, %v678_v60  ;;  %v2727_v62 = vpop.f32.mrb[6].mxu0 }
 0x103   : > { %v862_v47 = vadd.f32 %v2750_v45, %v3193_v43  ;;  %v856_v48 = vpop.f32.mrb[9].mxu1  ;;  %v693_v1 = vadd.f32 %v2727_v62, %v3173_v23  ;;  %v687_v2 = vpop.f32.mrb[7].mxu0 }
 0x104   : > { %v857_v51 = vadd.f32 %v3193_v43, %v856_v48  ;;  %v688_v4 = vadd.f32 %v3173_v23, %v687_v2 }
 0x105   : > { %957 = vst.msk [vmem:[#allocation2 + $0xf9] sm:$0xff] %vm756_vm3, %v862_v47  ;;  %764 = vst.msk [vmem:[#allocation2 + $0x51] sm:$0xff] %vm756_vm3, %v693_v1 }
 0x106   : > { %956 = vst.msk [vmem:[#allocation2 + $0xf1] sm:$0xff] %vm756_vm3, %v857_v51  ;;  %v2753_v53 = vpop.f32.mrb[10].mxu1  ;;  %763 = vst.msk [vmem:[#allocation2 + $0x49] sm:$0xff] %vm756_vm3, %v688_v4  ;;  %v2730_v6 = vpop.f32.mrb[8].mxu0 }
 0x107   : > { %v872_v55 = vadd.f32 %v2753_v53, %v3193_v43  ;;  %v866_v56 = vpop.f32.mrb[11].mxu1  ;;  %v703_v9 = vadd.f32 %v2730_v6, %v3173_v23  ;;  %v697_v10 = vpop.f32.mrb[9].mxu0  ;;  %1025 = vst.msk [vmem:[#allocation2 + $0xf0] sm:$0xff] (!%p2604_p11), %vm756_vm3, %v2942_v41  ;;  %1026 = vst.msk [vmem:[#allocation2 + $0xf8] sm:$0xff] (!%p2604_p11), %vm756_vm3, %v2942_v41 }
 0x108   : > { %v867_v59 = vadd.f32 %v3193_v43, %v866_v56  ;;  %v698_v12 = vadd.f32 %v3173_v23, %v697_v10  ;;  %1027 = vst.msk [vmem:[#allocation2 + $0x100] sm:$0x3] (!%p2604_p11), %vm1023_vm4, %v2942_v41 }
 0x109   : > { %959 = vst.msk [vmem:[#allocation2 + $0x111] sm:$0xff] %vm756_vm3, %v872_v55  ;;  %766 = vst.msk [vmem:[#allocation2 + $0x69] sm:$0xff] %vm756_vm3, %v703_v9 }
 0x10a   : > { %958 = vst.msk [vmem:[#allocation2 + $0x109] sm:$0xff] %vm756_vm3, %v867_v59  ;;  %v2756_v61 = vpop.f32.mrb[12].mxu1  ;;  %765 = vst.msk [vmem:[#allocation2 + $0x61] sm:$0xff] %vm756_vm3, %v698_v12  ;;  %v2733_v14 = vpop.f32.mrb[10].mxu0 }
 0x10b   : > { %v882_v63 = vadd.f32 %v2756_v61, %v3193_v43  ;;  %v876_v0 = vpop.f32.mrb[13].mxu1  ;;  %v713_v17 = vadd.f32 %v2733_v14, %v3173_v23  ;;  %v707_v18 = vpop.f32.mrb[11].mxu0 }
 0x10c   : > { %v877_v3 = vadd.f32 %v3193_v43, %v876_v0  ;;  %v708_v20 = vadd.f32 %v3173_v23, %v707_v18 }
 0x10d   : > { %961 = vst.msk [vmem:[#allocation2 + $0x129] sm:$0xff] %vm756_vm3, %v882_v63  ;;  %768 = vst.msk [vmem:[#allocation2 + $0x81] sm:$0xff] %vm756_vm3, %v713_v17 }
 0x10e   : > { %960 = vst.msk [vmem:[#allocation2 + $0x121] sm:$0xff] %vm756_vm3, %v877_v3  ;;  %v2759_v5 = vpop.f32.mrb[14].mxu1  ;;  %767 = vst.msk [vmem:[#allocation2 + $0x79] sm:$0xff] %vm756_vm3, %v708_v20 }
 0x10f   : > { %v892_v7 = vadd.f32 %v2759_v5, %v3193_v43  ;;  %v886_v8 = vpop.f32.mrb[15].mxu1 }
 0x110   : > { %v887_v11 = vadd.f32 %v3193_v43, %v886_v8 }
 0x111   : > { %963 = vst.msk [vmem:[#allocation2 + $0x141] sm:$0xff] %vm756_vm3, %v892_v7 }
 0x112   : > { %962 = vst.msk [vmem:[#allocation2 + $0x139] sm:$0xff] %vm756_vm3, %v887_v11  ;;  %v2762_v13 = vpop.f32.mrb[16].mxu1 }
 0x113   : > { %v902_v15 = vadd.f32 %v2762_v13, %v3193_v43  ;;  %v896_v16 = vpop.f32.mrb[17].mxu1 }
 0x114   : > { %v897_v19 = vadd.f32 %v3193_v43, %v896_v16 }
 0x115   : > { %965 = vst.msk [vmem:[#allocation2 + $0x159] sm:$0xff] %vm756_vm3, %v902_v15 }
 0x116   : > { %964 = vst.msk [vmem:[#allocation2 + $0x151] sm:$0xff] %vm756_vm3, %v897_v19  ;;  %v2765_v21 = vpop.f32.mrb[18].mxu1 }
 0x117   : > { %v912_v22 = vadd.f32 %v2765_v21, %v3193_v43  ;;  %v906_v24 = vpop.f32.mrb[19].mxu1 }
 0x118   : > { %v907_v25 = vadd.f32 %v3193_v43, %v906_v24 }
 0x119   : > { %967 = vst.msk [vmem:[#allocation2 + $0x171] sm:$0xff] %vm756_vm3, %v912_v22 }
 0x11a   : > { %966 = vst.msk [vmem:[#allocation2 + $0x169] sm:$0xff] %vm756_vm3, %v907_v25  ;;  %v2768_v26 = vpop.f32.mrb[20].mxu1 }
 0x11b   : > { %v922_v23 = vadd.f32 %v2768_v26, %v3193_v43  ;;  %v916_v27 = vpop.f32.mrb[21].mxu1 }
 0x11c   : > { %v917_v28 = vadd.f32 %v3193_v43, %v916_v27 }
 0x11d   : > { %969 = vst.msk [vmem:[#allocation2 + $0x189] sm:$0xff] %vm756_vm3, %v922_v23 }
 0x11e   : > { %968 = vst.msk [vmem:[#allocation2 + $0x181] sm:$0xff] %vm756_vm3, %v917_v28  ;;  %v2771_v29 = vpop.f32.mrb[22].mxu1 }
 0x11f   : > { %v932_v30 = vadd.f32 %v2771_v29, %v3193_v43  ;;  %v926_v31 = vpop.f32.mrb[23].mxu1 }
 0x120   : > { %v927_v32 = vadd.f32 %v3193_v43, %v926_v31 }
 0x121   : > { %971 = vst.msk [vmem:[#allocation2 + $0x1a1] sm:$0xff] %vm756_vm3, %v932_v30 }
 0x122   : > { %970 = vst.msk [vmem:[#allocation2 + $0x199] sm:$0xff] %vm756_vm3, %v927_v32  ;;  %v2774_v33 = vpop.f32.mrb[24].mxu1 }
 0x123   : > { %v942_v34 = vadd.f32 %v2774_v33, %v3193_v43  ;;  %v936_v35 = vpop.f32.mrb[25].mxu1 }
 0x124   : > { %v937_v36 = vadd.f32 %v3193_v43, %v936_v35  ;;  %1020 = sbr.rel (%p2604_p11) target bundleno = 299 (0x12b), region = 60 }
 0x125   : > { %973 = vst.msk [vmem:[#allocation2 + $0x1b9] sm:$0xff] %vm756_vm3, %v942_v34 }
 0x126   : > { %972 = vst.msk [vmem:[#allocation2 + $0x1b1] sm:$0xff] %vm756_vm3, %v937_v36  ;;  %v2777_v37 = vpop.f32.mrb[26].mxu1 }
 0x127   : > { %v952_v38 = vadd.f32 %v2777_v37, %v3193_v43  ;;  %v946_v39 = vpop.f32.mrb[27].mxu1 }
 0x128   : > { %v947_v40 = vadd.f32 %v3193_v43, %v946_v39 }
 0x129   : > { %975 = vst.msk [vmem:[#allocation2 + $0x1d1] sm:$0xff] %vm756_vm3, %v952_v38 }
 0x12a   : > { %974 = vst.msk [vmem:[#allocation2 + $0x1c9] sm:$0xff] %vm756_vm3, %v947_v40 }
 0x12b PF: > { %p2605_p12 = scmp.ne.s32.totalorder %s2923_s30, 1 }
 0x12c   : > { %vm1035_vm5 = vcmask (!%p2605_p12), 58368   ;;  %v2943_v42 = vmov (!%p2605_p12), 0.0  }
 0x12d   : > { %1031 = sbr.rel (%p2605_p12) target bundleno = 308 (0x134), region = 64  ;;  %1033 = vst.msk [vmem:[#allocation2 + $0xd8] sm:$0xff] (!%p2605_p12), %vm756_vm3, %v2943_v42  ;;  %1034 = vst.msk [vmem:[#allocation2 + $0xe0] sm:$0xff] (!%p2605_p12), %vm756_vm3, %v2943_v42 }
 0x12e   : > { %1037 = vst.msk [vmem:[#allocation2 + $0x1c8] sm:$0xff] (!%p2605_p12), %vm756_vm3, %v2943_v42  ;;  %1038 = vst.msk [vmem:[#allocation2 + $0x1d0] sm:$0xff] (!%p2605_p12), %vm756_vm3, %v2943_v42 }
 0x12f   : > { %1036 = vst.msk [vmem:[#allocation2 + $0xe8] sm:$0x3] (!%p2605_p12), %vm1035_vm5, %v2943_v42  ;;  %1039 = vst.msk [vmem:[#allocation2 + $0x1d8] sm:$0x3] (!%p2605_p12), %vm1035_vm5, %v2943_v42 }
 0x134 PF: > { %v2174_v43 = vld [vmem:[%s4358_s7] sm:$0xff]  ;;  %v1184_v52 = vld [vmem:[#allocation2 + $0x18] sm:$0xff]  ;;  %v1344_v63 = vld [vmem:[#allocation2 + $0x30] sm:$0xff] }
 0x135   : > { %v1040_v44 = vld [vmem:[#allocation2] sm:$0xff]  ;;  %2778 = vmatprep.subr.mxu0 %v2174_v43  ;;  %v1526_v5 = vld [vmem:[#allocation2 + $0xf0] sm:$0xff]  ;;  %v1671_v16 = vld [vmem:[#allocation2 + $0x108] sm:$0xff] }
 0x136   : > { %v3276_v45 = vld [vmem:[%s4356_s5] ss:$0 sm:$0xff]  ;;  %v1077_v47 = vld [vmem:[#allocation2 + $0x1] sm:$0xff]  ;;  %2779 = vmatpush3.msra.mxu0 %v2174_v43  ;;  %v3324_v7 = vld [vmem:[%s4356_s5 + $0x10] ss:$0 sm:$0xff] }
 0x137   : > { %v1061_v46 = vmul.f32 %v3276_v45, %v1040_v44  ;;  %v3282_v48 = vld [vmem:[%s4356_s5 + $0x1] ss:$0 sm:$0xff]  ;;  %v1130_v49 = vld [vmem:[#allocation2 + $0x2] sm:$0xff]  ;;  %v1237_v55 = vld [vmem:[#allocation2 + $0x19] sm:$0xff]  ;;  %v1063_v58 = vmul.f32 %v3276_v45, %v1184_v52  ;;  %v1548_v12 = vmul.f32 %v3324_v7, %v1526_v5  ;;  %v3366_v33 = vmul.f32 %v3276_v45, %v1344_v63 }
 0x138   : > { %4388 = vst [vmem:[#allocation3_spill] sm:$0xff] %v3282_v48  ;;  %v1098_v50 = vmul.f32 %v3282_v48, %v1077_v47  ;;  %v3288_v51 = vld [vmem:[%s4356_s5 + $0x2] ss:$0 sm:$0xff]  ;;  %v3293_v53 = vld [vmem:[%s4356_s5 + $0x3] ss:$0 sm:$0xff]  ;;  %v1290_v57 = vld [vmem:[#allocation2 + $0x1a] sm:$0xff]  ;;  %v1100_v61 = vmul.f32 %v3282_v48, %v1237_v55 }
 0x139   : > { %4389 = vst [vmem:[#allocation4_spill] sm:$0xff] %v3288_v51  ;;  %v1151_v54 = vmul.f32 %v3288_v51, %v1130_v49  ;;  %v3299_v56 = vld [vmem:[%s4356_s5 + $0x4] ss:$0 sm:$0xff]  ;;  %v1205_v60 = vmul.f32 %v3293_v53, %v1184_v52  ;;  %v3307_v62 = vld [vmem:[%s4356_s5 + $0x5] ss:$0 sm:$0xff]  ;;  %v1153_v0 = vmul.f32 %v3288_v51, %v1290_v57  ;;  %v1564_v8 = vld [vmem:[#allocation2 + $0xf1] sm:$0xff]  ;;  %v1207_v22 = vmul.f32 %v3293_v53, %v1344_v63 }
 0x13a   : > { %v1114_v59 = vadd.f32 %v1098_v50, %v1061_v46  ;;  %v1258_v2 = vmul.f32 %v3299_v56, %v1237_v55  ;;  %v3314_v3 = vld [vmem:[%s4356_s5 + $0x6] ss:$0 sm:$0xff]  ;;  %v3319_v4 = vld [vmem:[%s4356_s5 + $0x7] ss:$0 sm:$0xff]  ;;  %v1116_v6 = vadd.f32 %v1100_v61, %v1063_v58  ;;  %v3329_v9 = vld [vmem:[%s4356_s5 + $0x11] ss:$0 sm:$0xff]  ;;  %v1311_v11 = vmul.f32 %v3307_v62, %v1290_v57 }
 0x13b   : > { %v1585_v13 = vmul.f32 %v3329_v9, %v1564_v8  ;;  %v1617_v14 = vld [vmem:[#allocation2 + $0xf2] sm:$0xff]  ;;  %v3342_v17 = vld [vmem:[%s4356_s5 + $0x8] ss:$0 sm:$0xff]  ;;  %v1365_v25 = vmul.f32 %v3314_v3, %v1344_v63  ;;  %v1724_v31 = vld [vmem:[#allocation2 + $0x109] sm:$0xff]  ;;  %v1550_v61 = vmul.f32 %v3324_v7, %v1671_v16 }
 0x13c   : > { %v1167_v1 = vadd.f32 %v1151_v54, %v1114_v59  ;;  %v3337_v15 = vld [vmem:[%s4356_s5 + $0x12] ss:$0 sm:$0xff]  ;;  %v3348_v19 = vld [vmem:[%s4356_s5 + $0x13] ss:$0 sm:$0xff]  ;;  %v3353_v20 = vld [vmem:[%s4356_s5 + $0x14] ss:$0 sm:$0xff]  ;;  %v1169_v21 = vadd.f32 %v1153_v0, %v1116_v6  ;;  %v1587_v63 = vmul.f32 %v3329_v9, %v1724_v31 }
 0x13d   : > { %v1638_v18 = vmul.f32 %v3337_v15, %v1617_v14  ;;  %v1397_v26 = vld [vmem:[#allocation2 + $0x31] sm:$0xff]  ;;  %v1601_v23 = vadd.f32 %v1585_v13, %v1548_v12  ;;  %v1692_v27 = vmul.f32 %v3348_v19, %v1671_v16  ;;  %v1745_v37 = vmul.f32 %v3353_v20, %v1724_v31  ;;  %v1041_v41 = vld [vmem:[#allocation2 + $0x8] sm:$0xff]  ;;  %v3380_v52 = vld [vmem:[#allocation2 + $0x120] sm:$0xff] }
 0x13e   : > { %v1221_v10 = vadd.f32 %v1205_v60, %v1167_v1  ;;  %v3361_v28 = vld [vmem:[%s4356_s5 + $0x15] ss:$0 sm:$0xff]  ;;  %v1418_v29 = vmul.f32 %v3319_v4, %v1397_v26  ;;  %v1260_v32 = vmul.f32 %v3299_v56, %v1397_v26  ;;  %v1777_v38 = vld [vmem:[#allocation2 + $0x10a] sm:$0xff]  ;;  %v3373_v39 = vld [vmem:[%s4356_s5 + $0x16] ss:$0 sm:$0xff]  ;;  %v1223_v44 = vadd.f32 %v1207_v22, %v1169_v21 }
 0x13f   : > { %v1450_v30 = vld [vmem:[#allocation2 + $0x32] sm:$0xff]  ;;  %v1654_v36 = vadd.f32 %v1638_v18, %v1601_v23  ;;  %v1798_v40 = vmul.f32 %v3361_v28, %v1777_v38  ;;  %v1078_v42 = vld [vmem:[#allocation2 + $0x9] sm:$0xff]  ;;  %v3378_v47 = vmul.f32 %v3282_v48, %v1397_v26  ;;  %v1062_v54 = vmul.f32 %v3276_v45, %v1041_v41  ;;  %v3384_v57 = vld [vmem:[#allocation2 + $0x20] sm:$0xff] }
 0x140   : > { %v1274_v24 = vadd.f32 %v1258_v2, %v1221_v10  ;;  %v1471_v35 = vmul.f32 %v3342_v17, %v1450_v30  ;;  %v1131_v43 = vld [vmem:[#allocation2 + $0xa] sm:$0xff]  ;;  %v1313_v46 = vmul.f32 %v3307_v62, %v1450_v30  ;;  %v1099_v55 = vmul.f32 %v3282_v48, %v1078_v42  ;;  %v3389_v60 = vld [vmem:[#allocation2 + $0x21] sm:$0xff]  ;;  %v1527_v6 = vld [vmem:[#allocation2 + $0xf8] sm:$0xff] }
 0x141   : > { %v1708_v50 = vadd.f32 %v1692_v27, %v1654_v36  ;;  %v1852_v58 = vmul.f32 %v3373_v39, %v3380_v52  ;;  %v1152_v59 = vmul.f32 %v3288_v51, %v1131_v43  ;;  %v1206_v5 = vmul.f32 %v3293_v53, %v3384_v57  ;;  %v1565_v8 = vld [vmem:[#allocation2 + $0xf9] sm:$0xff]  ;;  %v3404_v16 = vld [vmem:[#allocation2 + $0x110] sm:$0xff]  ;;  %v1291_v23 = vld [vmem:[#allocation2 + $0x22] sm:$0xff] }
 0x142   : > { %v1327_v34 = vadd.f32 %v1311_v11, %v1274_v24  ;;  %v1115_v2 = vadd.f32 %v1099_v55, %v1062_v54  ;;  %v1618_v10 = vld [vmem:[#allocation2 + $0xfa] sm:$0xff]  ;;  %v1259_v12 = vmul.f32 %v3299_v56, %v3389_v60  ;;  %v1549_v13 = vmul.f32 %v3324_v7, %v1527_v6  ;;  %v3409_v24 = vld [vmem:[%s4356_s5 + $0x17] ss:$0 sm:$0xff]  ;;  %v3429_v42 = vld [vmem:[%s4356_s5 + $0x18] ss:$0 sm:$0xff] }
 0x143   : > { %v1761_v1 = vadd.f32 %v1745_v37, %v1708_v50  ;;  %v3398_v11 = vld [vmem:[%s4357_s6] ss:$0 sm:$0xff]  ;;  %v1586_v14 = vmul.f32 %v3329_v9, %v1565_v8  ;;  %v1276_v18 = vadd.f32 %v1260_v32, %v1223_v44  ;;  %4390 = vst [vmem:[#allocation5_spill] sm:$0xff] %v3409_v24  ;;  %v1639_v26 = vmul.f32 %v3337_v15, %v1618_v10 }
 0x144   : > { %v1381_v49 = vadd.f32 %v1365_v25, %v1327_v34  ;;  %v1168_v25 = vadd.f32 %v1152_v59, %v1115_v2  ;;  %v1640_v31 = vmul.f32 %v3337_v15, %v1777_v38  ;;  %v3416_v34 = vmul.f32 %v3288_v51, %v1450_v30  ;;  %4391 = vst [vmem:[#allocation6_spill] sm:$0xff] %v3429_v42  ;;  %v3431_v38 = vld [vmem:[#allocation2 + $0x38] sm:$0xff] }
 0x145   : > { %v1814_v22 = vadd.f32 %v1798_v40, %v1761_v1  ;;  %v1602_v27 = vadd.f32 %v1586_v14, %v1549_v13  ;;  %v1312_v37 = vmul.f32 %v3307_v62, %v1291_v23  ;;  %v1603_v40 = vadd.f32 %v1587_v63, %v1550_v61  ;;  %v3438_v59 = vld [vmem:[#allocation2 + $0x111] sm:$0xff]  ;;  %v3440_v61 = vld [vmem:[#allocation2 + $0x48] sm:$0xff] }
 0x146   : > { %v1434_v0 = vadd.f32 %v1418_v29, %v1381_v49  ;;  %v1693_v29 = vmul.f32 %v3348_v19, %v3404_v16  ;;  %v1222_v36 = vadd.f32 %v1206_v5, %v1168_v25  ;;  %v1329_v43 = vadd.f32 %v1313_v46, %v1276_v18  ;;  %v3442_v63 = vld [vmem:[#allocation2 + $0x49] sm:$0xff]  ;;  %v3461_v18 = vld [vmem:[#allocation2 + $0x3a] sm:$0xff] }
 0x147   : > { %v1655_v30 = vadd.f32 %v1639_v26, %v1602_v27  ;;  %v1694_v44 = vmul.f32 %v3348_v19, %v3380_v52  ;;  %v1868_v49 = vadd.f32 %v1852_v58, %v1814_v22  ;;  %v1366_v55 = vmul.f32 %v3314_v3, %v3431_v38  ;;  %v3452_v5 = vld [vmem:[#allocation2 + $0x122] sm:$0xff] }
 0x148   : > { %v1487_v21 = vadd.f32 %v1471_v35, %v1434_v0  ;;  %v3421_v35 = vld [vmem:[#allocation2 + $0x121] sm:$0xff]  ;;  %v1275_v54 = vadd.f32 %v1259_v12, %v1222_v36  ;;  %v3444_v0 = vld [vmem:[#allocation2 + $0x39] sm:$0xff]  ;;  %v1746_v46 = vmul.f32 %v3353_v20, %v3438_v59  ;;  %v1367_v58 = vmul.f32 %v3314_v3, %v3440_v61  ;;  %v3457_v12 = vld [vmem:[#allocation2 + $0x4a] sm:$0xff] }
 0x149   : > { %v1905_v41 = vmul.f32 %v3409_v24, %v3421_v35  ;;  %v1709_v1 = vadd.f32 %v1693_v29, %v1655_v30  ;;  %v1420_v2 = vmul.f32 %v3319_v4, %v3442_v63  ;;  %v1419_v10 = vmul.f32 %v3319_v4, %v3444_v0  ;;  %v1778_v36 = vld [vmem:[#allocation2 + $0x112] sm:$0xff] }
 0x14a   : > { %v3419_v32 = vadd.f32 %v3398_v11, %v1487_v21  ;;  %v1328_v8 = vadd.f32 %v1312_v37, %v1275_v54  ;;  %v1656_v13 = vadd.f32 %v1640_v31, %v1603_v40  ;;  %v1958_v14 = vmul.f32 %v3429_v42, %v3452_v5  ;;  %v3472_v37 = vld [vmem:[#allocation2 + $0x128] sm:$0xff] }
 0x14b   : > { %v1383_v21 = vadd.f32 %v1367_v58, %v1329_v43  ;;  %v1473_v22 = vmul.f32 %v3342_v17, %v3457_v12  ;;  %v3467_v25 = vadd.f32 %v3378_v47, %v3366_v33  ;;  %v1921_v26 = vadd.f32 %v1905_v41, %v1868_v49  ;;  %v3478_v41 = vld [vmem:[#allocation2 + $0x129] sm:$0xff] }
 0x14c   : > { %v2030_v50 = vmul.f32 0.044715, %v3419_v32  ;;  %v1382_v29 = vadd.f32 %v1366_v55, %v1328_v8  ;;  %v1472_v31 = vmul.f32 %v3342_v17, %v3461_v18  ;;  %v1762_v40 = vadd.f32 %v1746_v46, %v1709_v1 }
 0x14d   : > { %v1799_v30 = vmul.f32 %v3361_v28, %v1778_v36  ;;  %v1853_v43 = vmul.f32 %v3373_v39, %v3472_v37  ;;  %v1710_v49 = vadd.f32 %v1694_v44, %v1656_v13  ;;  %v1747_v54 = vmul.f32 %v3353_v20, %v3421_v35  ;;  %v3492_v44 = vld [vmem:[%s4357_s6 + $0x1] ss:$0 sm:$0xff] }
 0x14e   : > { %v2046_v6 = vmul.f32 %v2030_v50, %v3419_v32  ;;  %v1436_v50 = vadd.f32 %v1420_v2, %v1383_v21  ;;  %v1435_v47 = vadd.f32 %v1419_v10, %v1382_v29  ;;  %v1906_v55 = vmul.f32 %v3409_v24, %v3478_v41  ;;  %4392 = vst [vmem:[#allocation7_spill] sm:$0xff] %v3492_v44  ;;  %v3510_v29 = vld [vmem:[#allocation2 + $0x138] sm:$0xff] }
 0x14f   : > { %v1064_v1 = vmul.f32 %v3276_v45, %v3384_v57  ;;  %v1101_v46 = vmul.f32 %v3282_v48, %v3389_v60  ;;  %v1974_v2 = vadd.f32 %v1958_v14, %v1921_v26  ;;  %v1154_v10 = vmul.f32 %v3288_v51, %v1291_v23  ;;  %v3535_v48 = vld [vmem:[#allocation2 + $0x51] sm:$0xff] }
 0x150   : > { %v2062_v27 = vmul.f32 %v2046_v6, %v3419_v32  ;;  %v1489_v58 = vadd.f32 %v1473_v22, %v1436_v50  ;;  %v1488_v8 = vadd.f32 %v1472_v31, %v1435_v47  ;;  %v1800_v21 = vmul.f32 %v3361_v28, %v3452_v5  ;;  %v3504_v22 = vld [vmem:[#allocation2 + $0x12a] sm:$0xff]  ;;  %4396 = vst [vmem:[#allocation11_spill] sm:$0xff] %v3535_v48 }
 0x151   : > { %v1117_v57 = vadd.f32 %v1101_v46, %v1064_v1  ;;  %v1208_v60 = vmul.f32 %v3293_v53, %v3431_v38  ;;  %v1815_v23 = vadd.f32 %v1799_v30, %v1762_v40  ;;  %v1763_v26 = vadd.f32 %v1747_v54, %v1710_v49  ;;  %v3520_v49 = vld [vmem:[#allocation2 + $0x139] sm:$0xff] }
 0x152   : > { %v2078_v33 = vadd.f32 %v2062_v27, %v3419_v32  ;;  %v3495_v13 = vadd.f32 %v3398_v11, %v1489_v58  ;;  %v3502_v14 = vadd.f32 %v3398_v11, %v1488_v8  ;;  %v3508_v27 = vmul.f32 %v3429_v42, %v3504_v22  ;;  %4393 = vst [vmem:[#allocation8_spill] sm:$0xff] %v3520_v49  ;;  %v3527_v8 = vld [vmem:[#allocation2 + $0x50] sm:$0xff] }
 0x153   : > { %v1170_v50 = vadd.f32 %v1154_v10, %v1117_v57  ;;  %v1998_v47 = vadd.f32 %v3492_v44, %v1974_v2  ;;  %v2014_v58 = vmul.f32 0.5, %v3419_v32  ;;  %v1854_v30 = vmul.f32 %v3373_v39, %v3510_v29  ;;  %4394 = vst [vmem:[#allocation9_spill] sm:$0xff] %v3527_v8  ;;  %v3532_v44 = vld [vmem:[#allocation2 + $0x13a] sm:$0xff] }
 0x154   : > { %v2094_v6 = vmul.f32 0.7978846, %v2078_v33  ;;  %v2032_v31 = vmul.f32 0.044715, %v3495_v13  ;;  %v1261_v33 = vmul.f32 %v3299_v56, %v3444_v0  ;;  %v2031_v40 = vmul.f32 0.044715, %v3502_v14 }
 0x155   : > { %v1907_v54 = vmul.f32 %v3409_v24, %v3520_v49  ;;  %v1224_v46 = vadd.f32 %v1208_v60, %v1170_v50  ;;  %v1869_v2 = vadd.f32 %v1853_v43, %v1815_v23  ;;  %v1816_v10 = vadd.f32 %v1800_v21, %v1763_v26  ;;  %4395 = vst [vmem:[#allocation10_spill] sm:$0xff] %v3532_v44 }
 0x156   : > { %2849 = vtanh.f32 %v2094_v6  ;;  %v2048_v1 = vmul.f32 %v2032_v31, %v3495_v13  ;;  %v1314_v6 = vmul.f32 %v3307_v62, %v3461_v18  ;;  %v2047_v32 = vmul.f32 %v2031_v40, %v3502_v14  ;;  %v3548_v40 = vld [vmem:[#allocation2 + $0x52] sm:$0xff] }
 0x157   : > { %v1368_v57 = vmul.f32 %v3314_v3, %v3527_v8  ;;  %v1277_v24 = vadd.f32 %v1261_v33, %v1224_v46  ;;  %v1551_v60 = vmul.f32 %v3324_v7, %v3404_v16  ;;  %v1588_v31 = vmul.f32 %v3329_v9, %v3438_v59 }
 0x158   : > { %v2064_v51 = vmul.f32 %v2048_v1, %v3495_v13  ;;  %v2063_v43 = vmul.f32 %v2047_v32, %v3502_v14  ;;  %v1960_v21 = vmul.f32 %v3429_v42, %v3532_v44  ;;  %v1421_v23 = vmul.f32 %v3319_v4, %v3535_v48 }
 0x159   : > { %v1641_v26 = vmul.f32 %v3337_v15, %v1778_v36  ;;  %v1330_v33 = vadd.f32 %v1314_v6, %v1277_v24  ;;  %v1604_v1 = vadd.f32 %v1588_v31, %v1551_v60  ;;  %v1695_v16 = vmul.f32 %v3348_v19, %v3472_v37 }
 0x15a   : > { %v2080_v50 = vadd.f32 %v2064_v51, %v3495_v13  ;;  %v1922_v59 = vadd.f32 %v1906_v55, %v1869_v2  ;;  %v2079_v46 = vadd.f32 %v2063_v43, %v3502_v14  ;;  %v1870_v32 = vadd.f32 %v1854_v30, %v1816_v10 }
 0x15b   : > { %v1474_v42 = vmul.f32 %v3342_v17, %v3548_v40  ;;  %v1384_v48 = vadd.f32 %v1368_v57, %v1330_v33  ;;  %v1657_v44 = vadd.f32 %v1641_v26, %v1604_v1  ;;  %v1748_v51 = vmul.f32 %v3353_v20, %v3478_v41  ;;  %v3565_v26 = vld [vmem:[#allocation2 + $0x60] sm:$0xff] }
 0x15c   : > { %v2096_v8 = vmul.f32 0.7978846, %v2080_v50  ;;  %v2095_v36 = vmul.f32 0.7978846, %v2079_v46  ;;  %v1171_v6 = vadd.f32 %v3416_v34, %v3467_v25  ;;  %v1209_v55 = vmul.f32 %v3293_v53, %v3440_v61  ;;  %v3583_v46 = vld [vmem:[#allocation2 + $0x140] sm:$0xff] }
 0x15d   : > { %v1262_v30 = vmul.f32 %v3299_v56, %v3442_v63  ;;  %v1437_v10 = vadd.f32 %v1421_v23, %v1384_v48  ;;  %v1711_v60 = vadd.f32 %v1695_v16, %v1657_v44  ;;  %v1923_v57 = vadd.f32 %v1907_v54, %v1870_v32 }
 0x15e   : > { %2851 = vtanh.f32 %v2096_v8  ;;  %v1225_v31 = vadd.f32 %v1209_v55, %v1171_v6  ;;  %v1315_v43 = vmul.f32 %v3307_v62, %v3457_v12  ;;  %v1801_v25 = vmul.f32 %v3361_v28, %v3504_v22 }
 0x15f   : > { %2853 = vtanh.f32 %v2095_v36  ;;  %v1490_v34 = vadd.f32 %v1474_v42, %v1437_v10  ;;  %v1369_v33 = vmul.f32 %v3314_v3, %v3565_v26  ;;  %v1764_v1 = vadd.f32 %v1748_v51, %v1711_v60  ;;  %v3579_v42 = vld [vmem:[#allocation2 + $0x61] sm:$0xff] }
 0x160   : > { %v2850_v24 = vpop.eup %2849  ;;  %v1278_v8 = vadd.f32 %v1262_v30, %v1225_v31  ;;  %v1552_v48 = vmul.f32 %v3324_v7, %v3380_v52  ;;  %v1589_v44 = vmul.f32 %v3329_v9, %v3421_v35  ;;  %v1975_v23 = vadd.f32 %v3508_v27, %v1922_v59  ;;  %v3604_v60 = vld [vmem:[#allocation2 + $0x141] sm:$0xff] }
 0x161   : > { %v2126_v2 = vadd.f32 1.0, %v2850_v24  ;;  %v1642_v16 = vmul.f32 %v3337_v15, %v3452_v5  ;;  %v1422_v52 = vmul.f32 %v3319_v4, %v3579_v42  ;;  %v1696_v35 = vmul.f32 %v3348_v19, %v3510_v29  ;;  %v3594_v24 = vld [vmem:[#allocation2 + $0x62] sm:$0xff] }
 0x162   : > { %v1331_v32 = vadd.f32 %v1315_v43, %v1278_v8  ;;  %v1605_v51 = vadd.f32 %v1589_v44, %v1552_v48  ;;  %v1976_v27 = vadd.f32 %v1960_v21, %v1923_v57  ;;  %v1855_v59 = vmul.f32 %v3373_v39, %v3583_v46  ;;  %4397 = vst [vmem:[#allocation12_spill] sm:$0xff] %v3594_v24  ;;  %v4398_v43 = vld [vmem:[#allocation3_spill] sm:$0xff]  ;;  %v4401_v48 = vld [vmem:[#allocation5_spill] sm:$0xff] }
 0x163   : > { %v2142_v50 = vmul.f32 %v2126_v2, %v2014_v58  ;;  %v3577_v58 = vadd.f32 %v3398_v11, %v1490_v34  ;;  %v1817_v36 = vadd.f32 %v1801_v25, %v1764_v1  ;;  %v1475_v55 = vmul.f32 %v3342_v17, %v3594_v24  ;;  %v4399_v34 = vld [vmem:[#allocation4_spill] sm:$0xff] }
 0x164   : > { %v1385_v6 = vadd.f32 %v1369_v33, %v1331_v32  ;;  %v1658_v30 = vadd.f32 %v1642_v16, %v1605_v51  ;;  %v2015_v2 = vmul.f32 0.5, %v3502_v14  ;;  %v1066_v21 = vmul.f32 %v3276_v45, %v3431_v38  ;;  %v4400_v14 = vld [vmem:[#allocation7_spill] sm:$0xff] }
 0x165   : > { %v2158_v54 = vmul.f32 %v2142_v50, %v1998_v47  ;;  %v2016_v47 = vmul.f32 0.5, %v3495_v13  ;;  %v2033_v5 = vmul.f32 0.044715, %v3577_v58  ;;  %v1749_v13 = vmul.f32 %v3353_v20, %v3520_v49 }
 0x166   : > { %v1438_v57 = vadd.f32 %v1422_v52, %v1385_v6  ;;  %v1712_v31 = vadd.f32 %v1696_v35, %v1658_v30  ;;  %v1103_v50 = vmul.f32 %v4398_v43, %v3444_v0  ;;  %v1156_v25 = vmul.f32 %v4399_v34, %v3461_v18  ;;  %v4403_v6 = vld [vmem:[#allocation9_spill] sm:$0xff]  ;;  %v3620_v30 = vld [vmem:[#allocation2 + $0x142] sm:$0xff] }
 0x167   : > { %2780 = vmatprep.mubr.msk.f32.mxu0 %vm756_vm3, %v2158_v54  ;;  %v2049_v10 = vmul.f32 %v2033_v5, %v3577_v58  ;;  %v1999_v1 = vadd.f32 %v4400_v14, %v1975_v23  ;;  %v2000_v8 = vadd.f32 %v4400_v14, %v1976_v27  ;;  %v1908_v44 = vmul.f32 %v4401_v48, %v3604_v60  ;;  %v4402_v5 = vld [vmem:[#allocation10_spill] sm:$0xff] }
 0x168   : > { %v2852_v33 = vpop.eup %2851  ;;  %v1871_v32 = vadd.f32 %v1855_v59, %v1817_v36  ;;  %v1491_v52 = vadd.f32 %v1475_v55, %v1438_v57  ;;  %v1119_v51 = vadd.f32 %v1103_v50, %v1066_v21  ;;  %v1802_v18 = vmul.f32 %v3361_v28, %v4402_v5  ;;  %v4404_v59 = vld [vmem:[#allocation6_spill] sm:$0xff]  ;;  %v3625_v21 = vld [vmem:[#allocation2 + $0x150] sm:$0xff]  ;;  %v4405_v57 = vld [vmem:[#allocation11_spill] sm:$0xff] }
 0x169   : > { %v2065_v38 = vmul.f32 %v2049_v10, %v3577_v58  ;;  %v2854_v54 = vpop.eup %2853  ;;  %v2128_v16 = vadd.f32 1.0, %v2852_v33  ;;  %v1210_v23 = vmul.f32 %v3293_v53, %v4403_v6  ;;  %v1765_v10 = vadd.f32 %v1749_v13, %v1712_v31 }
 0x16a   : > { %v2127_v35 = vadd.f32 1.0, %v2854_v54  ;;  %v1514_v24 = vadd.f32 %v3398_v11, %v1491_v52  ;;  %v1172_v49 = vadd.f32 %v1156_v25, %v1119_v51  ;;  %v1961_v36 = vmul.f32 %v4404_v59, %v3620_v30  ;;  %v3633_v52 = vld [vmem:[#allocation2 + $0x68] sm:$0xff] }
 0x16b   : > { %v2081_v0 = vadd.f32 %v2065_v38, %v3577_v58  ;;  %v2144_v27 = vmul.f32 %v2128_v16, %v2016_v47  ;;  %v1263_v50 = vmul.f32 %v3299_v56, %v4405_v57  ;;  %v1924_v54 = vadd.f32 %v1908_v44, %v1871_v32 }
 0x16c   : > { %v2143_v33 = vmul.f32 %v2127_v35, %v2015_v2  ;;  %v1856_v47 = vmul.f32 %v3373_v39, %v3625_v21  ;;  %v2034_v16 = vmul.f32 0.044715, %v1514_v24  ;;  %v1226_v13 = vadd.f32 %v1210_v23, %v1172_v49 }
 0x16d   : > { %v2097_v55 = vmul.f32 0.7978846, %v2081_v0  ;;  %v2160_v38 = vmul.f32 %v2144_v27, %v2000_v8  ;;  %v1316_v2 = vmul.f32 %v3307_v62, %v3548_v40  ;;  %v1818_v31 = vadd.f32 %v1802_v18, %v1765_v10  ;;  %v3646_v0 = vld [vmem:[#allocation2 + $0x151] sm:$0xff] }
 0x16e   : > { %v2159_v6 = vmul.f32 %v2143_v33, %v1999_v1  ;;  %v2050_v25 = vmul.f32 %v2034_v16, %v1514_v24  ;;  %v1553_v51 = vmul.f32 %v3324_v7, %v3472_v37  ;;  %v1590_v8 = vmul.f32 %v3329_v9, %v3478_v41  ;;  %4406 = vst [vmem:[#allocation3_spill] sm:$0xff] %v3646_v0  ;;  %v3648_v37 = vld [vmem:[#allocation2 + $0x152] sm:$0xff]  ;;  %v3650_v41 = vld [vmem:[#allocation2 + $0x69] sm:$0xff] }
 0x16f   : > { %2855 = vtanh.f32 %v2097_v55  ;;  %v2017_v44 = vmul.f32 0.5, %v3577_v58  ;;  %v1279_v1 = vadd.f32 %v1263_v50, %v1226_v13  ;;  %v1370_v49 = vmul.f32 %v3314_v3, %v3633_v52  ;;  %4407 = vst [vmem:[#allocation4_spill] sm:$0xff] %v3648_v37  ;;  %v3660_v55 = vld [vmem:[#allocation2 + $0x6a] sm:$0xff] }
 0x170   : > { %2781 = vmatmul.mubr.msk.f32.vlgmr.msra.gmra.mrb[12].mxu0 %vm756_vm3, %v2159_v6  ;;  %v1643_v32 = vmul.f32 %v3337_v15, %v3504_v22  ;;  %v1977_v35 = vadd.f32 %v1961_v36, %v1924_v54  ;;  %v2066_v18 = vmul.f32 %v2050_v25, %v1514_v24  ;;  %v1606_v6 = vadd.f32 %v1590_v8, %v1553_v51 }
 0x171   : > { %2783 = vmatprep.mubr.msk.f32.mxu0 %vm756_vm3, %v2160_v38  ;;  %v1697_v58 = vmul.f32 %v3348_v19, %v3583_v46  ;;  %v1909_v23 = vmul.f32 %v4401_v48, %v3646_v0  ;;  %v1962_v22 = vmul.f32 %v4404_v59, %v3648_v37  ;;  %v1332_v27 = vadd.f32 %v1316_v2, %v1279_v1 }
 0x172   : > { %v1423_v10 = vmul.f32 %v3319_v4, %v3650_v41  ;;  %v1872_v33 = vadd.f32 %v1856_v47, %v1818_v31  ;;  %v2082_v36 = vadd.f32 %v2066_v18, %v1514_v24  ;;  %v1659_v50 = vadd.f32 %v1643_v32, %v1606_v6 }
 0x173   : > { %v1067_v38 = vmul.f32 %v3276_v45, %v3440_v61  ;;  %v1386_v54 = vadd.f32 %v1370_v49, %v1332_v27  ;;  %v1476_v16 = vmul.f32 %v3342_v17, %v3660_v55  ;;  %v1104_v13 = vmul.f32 %v4398_v43, %v3442_v63 }
 0x174   : > { %v1157_v2 = vmul.f32 %v4399_v34, %v3457_v12  ;;  %v2001_v25 = vadd.f32 %v4400_v14, %v1977_v35  ;;  %v2098_v47 = vmul.f32 0.7978846, %v2082_v36  ;;  %v1713_v31 = vadd.f32 %v1697_v58, %v1659_v50  ;;  %v4408_v58 = vld [vmem:[#allocation8_spill] sm:$0xff] }
 0x175   : > { %v1750_v51 = vmul.f32 %v3353_v20, %v3604_v60  ;;  %v3673_v8 = vmul.f32 0.5, %v1514_v24  ;;  %v1439_v61 = vadd.f32 %v1423_v10, %v1386_v54  ;;  %v1120_v1 = vadd.f32 %v1104_v13, %v1067_v38 }
 0x176   : > { %v1211_v49 = vmul.f32 %v3293_v53, %v3565_v26  ;;  %v1925_v32 = vadd.f32 %v1909_v23, %v1872_v33  ;;  %2857 = vtanh.f32 %v2098_v47  ;;  %v1264_v63 = vmul.f32 %v3299_v56, %v3579_v42  ;;  %v4409_v33 = vld [vmem:[#allocation12_spill] sm:$0xff] }
 0x177   : > { %v1554_v12 = vmul.f32 %v3324_v7, %v3510_v29  ;;  %v1492_v18 = vadd.f32 %v1476_v16, %v1439_v61  ;;  %v1173_v6 = vadd.f32 %v1157_v2, %v1120_v1  ;;  %v1591_v24 = vmul.f32 %v3329_v9, %v4408_v58  ;;  %v3692_v29 = vld [vmem:[#allocation2 + $0x158] sm:$0xff] }
 0x178   : > { %v1644_v27 = vmul.f32 %v3337_v15, %v4402_v5  ;;  %v1766_v36 = vadd.f32 %v1750_v51, %v1713_v31  ;;  %v1803_v23 = vmul.f32 %v3361_v28, %v3620_v30  ;;  %v1317_v50 = vmul.f32 %v3307_v62, %v4409_v33  ;;  %v3694_v16 = vld [vmem:[#allocation2 + $0x78] sm:$0xff] }
 0x179   : > { %v2856_v35 = vpop.eup %2855  ;;  %v3690_v38 = vadd.f32 %v3398_v11, %v1492_v18  ;;  %v1227_v54 = vadd.f32 %v1211_v49, %v1173_v6  ;;  %4410 = vst [vmem:[#allocation7_spill] sm:$0xff] %v3694_v16  ;;  %v1607_v13 = vadd.f32 %v1591_v24, %v1554_v12  ;;  %v1698_v5 = vmul.f32 %v3348_v19, %v3625_v21  ;;  %v3711_v58 = vld [vmem:[#allocation2 + $0x159] sm:$0xff] }
 0x17a   : > { %v2129_v10 = vadd.f32 1.0, %v2856_v35  ;;  %v1978_v47 = vadd.f32 %v1962_v22, %v1925_v32  ;;  %v1857_v31 = vmul.f32 %v3373_v39, %v3692_v29  ;;  %v1371_v51 = vmul.f32 %v3314_v3, %v3694_v16  ;;  %v3703_v35 = vld [vmem:[#allocation2 + $0x79] sm:$0xff]  ;;  %v4412_v22 = vld [vmem:[#allocation9_spill] sm:$0xff] }
 0x17b   : > { %v2035_v61 = vmul.f32 0.044715, %v3690_v38  ;;  %v1280_v1 = vadd.f32 %v1264_v63, %v1227_v54  ;;  %4411 = vst [vmem:[#allocation5_spill] sm:$0xff] %v3703_v35  ;;  %v1660_v49 = vadd.f32 %v1644_v27, %v1607_v13  ;;  %v1751_v12 = vmul.f32 %v3353_v20, %v3646_v0  ;;  %v3714_v63 = vld [vmem:[#allocation2 + $0x7a] sm:$0xff] }
 0x17c   : > { %v2145_v2 = vmul.f32 %v2129_v10, %v2017_v44  ;;  %v1819_v6 = vadd.f32 %v1803_v23, %v1766_v36  ;;  %v1424_v44 = vmul.f32 %v3319_v4, %v3703_v35  ;;  %v1068_v32 = vmul.f32 %v3276_v45, %v4412_v22  ;;  %4413 = vst [vmem:[#allocation10_spill] sm:$0xff] %v3714_v63 }
 0x17d   : > { %v2051_v24 = vmul.f32 %v2035_v61, %v3690_v38  ;;  %v1333_v10 = vadd.f32 %v1317_v50, %v1280_v1  ;;  %v1714_v54 = vadd.f32 %v1698_v5, %v1660_v49  ;;  %v1105_v27 = vmul.f32 %v4398_v43, %v4405_v57  ;;  %v3728_v61 = vld [vmem:[#allocation2 + $0x168] sm:$0xff] }
 0x17e   : > { %v2161_v18 = vmul.f32 %v2145_v2, %v2001_v25  ;;  %v1910_v25 = vmul.f32 %v4401_v48, %v3711_v58  ;;  %v1477_v36 = vmul.f32 %v3342_v17, %v3714_v63  ;;  %v1804_v23 = vmul.f32 %v3361_v28, %v3648_v37 }
 0x17f   : > { %v1158_v50 = vmul.f32 %v4399_v34, %v3548_v40  ;;  %v2067_v13 = vmul.f32 %v2051_v24, %v3690_v38  ;;  %v1387_v5 = vadd.f32 %v1371_v51, %v1333_v10  ;;  %v1767_v2 = vadd.f32 %v1751_v12, %v1714_v54 }
 0x180   : > { %2784 = vmatmul.mubr.msk.f32.gmra.mrb[14].mxu0 %vm756_vm3, %v2161_v18  ;;  %v1121_v57 = vadd.f32 %v1105_v27, %v1068_v32  ;;  %v2858_v1 = vpop.eup %2857  ;;  %v2002_v49 = vadd.f32 %v4400_v14, %v1978_v47  ;;  %v1873_v18 = vadd.f32 %v1857_v31, %v1819_v6  ;;  %v1858_v22 = vmul.f32 %v3373_v39, %v3728_v61  ;;  %v3745_v27 = vld [vmem:[#allocation2 + $0x15a] sm:$0xff] }
 0x181   : > { %v1212_v37 = vmul.f32 %v3293_v53, %v3633_v52  ;;  %v2130_v63 = vadd.f32 1.0, %v2858_v1  ;;  %v2083_v40 = vadd.f32 %v2067_v13, %v3690_v38  ;;  %v1440_v0 = vadd.f32 %v1424_v44, %v1387_v5 }
 0x182   : > { %v1265_v51 = vmul.f32 %v3299_v56, %v3650_v41  ;;  %v1174_v12 = vadd.f32 %v1158_v50, %v1121_v57  ;;  %v1318_v32 = vmul.f32 %v3307_v62, %v3660_v55  ;;  %v1555_v47 = vmul.f32 %v3324_v7, %v3583_v46 }
 0x183   : > { %v1592_v31 = vmul.f32 %v3329_v9, %v3604_v60  ;;  %v2146_v6 = vmul.f32 %v2130_v63, %v3673_v8  ;;  %v2099_v24 = vmul.f32 0.7978846, %v2083_v40  ;;  %v1493_v10 = vadd.f32 %v1477_v36, %v1440_v0  ;;  %v3754_v8 = vld [vmem:[#allocation2 + $0x80] sm:$0xff]  ;;  %v3756_v63 = vld [vmem:[#allocation2 + $0x169] sm:$0xff] }
 0x184   : > { %v1820_v54 = vadd.f32 %v1804_v23, %v1767_v2  ;;  %v1228_v44 = vadd.f32 %v1212_v37, %v1174_v12  ;;  %v1645_v50 = vmul.f32 %v3337_v15, %v3620_v30  ;;  %v1699_v5 = vmul.f32 %v3348_v19, %v3692_v29  ;;  %v3760_v30 = vld [vmem:[#allocation2 + $0x81] sm:$0xff] }
 0x185   : > { %v1608_v13 = vadd.f32 %v1592_v31, %v1555_v47  ;;  %v2162_v57 = vmul.f32 %v2146_v6, %v2002_v49  ;;  %v1963_v46 = vmul.f32 %v4404_v59, %v3745_v27  ;;  %2859 = vtanh.f32 %v2099_v24  ;;  %v3770_v31 = vld [vmem:[#allocation2 + $0x82] sm:$0xff] }
 0x186   : > { %v1516_v60 = vadd.f32 %v3398_v11, %v1493_v10  ;;  %v1926_v0 = vadd.f32 %v1910_v25, %v1873_v18  ;;  %v1281_v37 = vadd.f32 %v1265_v51, %v1228_v44  ;;  %v1372_v36 = vmul.f32 %v3314_v3, %v3754_v8  ;;  %v3776_v44 = vld [vmem:[#allocation2 + $0x16a] sm:$0xff] }
 0x187   : > { %v1661_v23 = vadd.f32 %v1645_v50, %v1608_v13  ;;  %2786 = vmatprep.mubr.msk.f32.mxu0 %vm756_vm3, %v2162_v57  ;;  %v1911_v2 = vmul.f32 %v4401_v48, %v3756_v63  ;;  %v1425_v49 = vmul.f32 %v3319_v4, %v3760_v30  ;;  %v1874_v40 = vadd.f32 %v1858_v22, %v1820_v54 }
 0x188   : > { %v2036_v1 = vmul.f32 0.044715, %v1516_v60  ;;  %v1334_v25 = vadd.f32 %v1318_v32, %v1281_v37  ;;  %v1752_v51 = vmul.f32 %v3353_v20, %v3711_v58  ;;  %v2019_v12 = vmul.f32 0.5, %v3690_v38  ;;  %v3788_v37 = vld [vmem:[#allocation2 + $0x170] sm:$0xff] }
 0x189   : > { %v1715_v18 = vadd.f32 %v1699_v5, %v1661_v23  ;;  %v1069_v6 = vmul.f32 %v3276_v45, %v3565_v26  ;;  %v1106_v24 = vmul.f32 %v4398_v43, %v3579_v42  ;;  %v1979_v10 = vadd.f32 %v1963_v46, %v1926_v0 }
 0x18a   : > { %v2052_v47 = vmul.f32 %v2036_v1, %v1516_v60  ;;  %v1388_v22 = vadd.f32 %v1372_v36, %v1334_v25  ;;  %v1478_v32 = vmul.f32 %v3342_v17, %v3770_v31  ;;  %v1159_v54 = vmul.f32 %v4399_v34, %v4409_v33 }
 0x18b   : > { %v1964_v38 = vmul.f32 %v4404_v59, %v3776_v44  ;;  %v1122_v50 = vadd.f32 %v1106_v24, %v1069_v6  ;;  %v1213_v26 = vmul.f32 %v3293_v53, %v3694_v16  ;;  %v1927_v5 = vadd.f32 %v1911_v2, %v1874_v40  ;;  %v4415_v6 = vld [vmem:[#allocation10_spill] sm:$0xff] }
 0x18c   : > { %v2068_v13 = vmul.f32 %v2052_v47, %v1516_v60  ;;  %v1441_v42 = vadd.f32 %v1425_v49, %v1388_v22  ;;  %v1768_v57 = vadd.f32 %v1752_v51, %v1715_v18  ;;  %v1805_v46 = vmul.f32 %v3361_v28, %v3745_v27  ;;  %v4414_v49 = vld [vmem:[#allocation3_spill] sm:$0xff]  ;;  %v4416_v22 = vld [vmem:[#allocation4_spill] sm:$0xff]  ;;  %v3810_v16 = vld [vmem:[#allocation2 + $0x91] sm:$0xff] }
 0x18d   : > { %v1175_v36 = vadd.f32 %v1159_v54, %v1122_v50  ;;  %v1266_v33 = vmul.f32 %v3299_v56, %v3703_v35  ;;  %v1556_v23 = vmul.f32 %v3324_v7, %v3625_v21  ;;  %v2003_v1 = vadd.f32 %v4400_v14, %v1979_v10 }
 0x18e   : > { %v2084_v0 = vadd.f32 %v2068_v13, %v1516_v60  ;;  %v1494_v25 = vadd.f32 %v1478_v32, %v1441_v42  ;;  %v1859_v2 = vmul.f32 %v3373_v39, %v3788_v37  ;;  %v1593_v40 = vmul.f32 %v3329_v9, %v4414_v49  ;;  %v3804_v32 = vld [vmem:[#allocation2 + $0x90] sm:$0xff] }
 0x18f   : > { %v2860_v18 = vpop.eup %2859  ;;  %v1229_v47 = vadd.f32 %v1213_v26, %v1175_v36  ;;  %v1319_v24 = vmul.f32 %v3307_v62, %v4415_v6  ;;  %v1646_v54 = vmul.f32 %v3337_v15, %v4416_v22  ;;  %v1821_v10 = vadd.f32 %v1805_v46, %v1768_v57  ;;  %v3808_v49 = vld [vmem:[#allocation2 + $0x171] sm:$0xff] }
 0x190   : > { %v2100_v51 = vmul.f32 0.7978846, %v2084_v0  ;;  %v2131_v13 = vadd.f32 1.0, %v2860_v18  ;;  %v1517_v21 = vadd.f32 %v3398_v11, %v1494_v25  ;;  %v1609_v50 = vadd.f32 %v1593_v40, %v1556_v23  ;;  %v3822_v18 = vld [vmem:[#allocation2 + $0x172] sm:$0xff] }
 0x191   : > { %v1980_v42 = vadd.f32 %v1964_v38, %v1927_v5  ;;  %v1282_v35 = vadd.f32 %v1266_v33, %v1229_v47  ;;  %v1373_v0 = vmul.f32 %v3314_v3, %v3804_v32  ;;  %v2020_v36 = vmul.f32 0.5, %v1516_v60  ;;  %v3818_v60 = vld [vmem:[#allocation2 + $0x92] sm:$0xff] }
 0x192   : > { %2861 = vtanh.f32 %v2100_v51  ;;  %v2147_v26 = vmul.f32 %v2131_v13, %v2019_v12  ;;  %v2037_v6 = vmul.f32 0.044715, %v1517_v21  ;;  %v1700_v25 = vmul.f32 %v3348_v19, %v3728_v61 }
 0x193   : > { %v1912_v57 = vmul.f32 %v4401_v48, %v3808_v49  ;;  %v1335_v46 = vadd.f32 %v1319_v24, %v1282_v35  ;;  %v1426_v38 = vmul.f32 %v3319_v4, %v3810_v16  ;;  %v1662_v5 = vadd.f32 %v1646_v54, %v1609_v50  ;;  %v3842_v50 = vld [vmem:[#allocation2 + $0x180] sm:$0xff] }
 0x194   : > { %v2163_v33 = vmul.f32 %v2147_v26, %v2003_v1  ;;  %v1875_v23 = vadd.f32 %v1859_v2, %v1821_v10  ;;  %v2053_v12 = vmul.f32 %v2037_v6, %v1517_v21  ;;  %v1070_v40 = vmul.f32 %v3276_v45, %v3633_v52 }
 0x195   : > { %v1389_v51 = vadd.f32 %v1373_v0, %v1335_v46  ;;  %v1479_v47 = vmul.f32 %v3342_v17, %v3818_v60  ;;  %v1107_v35 = vmul.f32 %v4398_v43, %v3650_v41  ;;  %v1160_v24 = vmul.f32 %v4399_v34, %v3660_v55 }
 0x196   : > { %2787 = vmatmul.mubr.msk.f32.gmra.mrb[16].mxu0 %vm756_vm3, %v2163_v33  ;;  %v1965_v1 = vmul.f32 %v4404_v59, %v3822_v18  ;;  %v2069_v2 = vmul.f32 %v2053_v12, %v1517_v21  ;;  %v1716_v6 = vadd.f32 %v1700_v25, %v1662_v5  ;;  %v1753_v45 = vmul.f32 %v3353_v20, %v3756_v63 }
 0x197   : > { %v2004_v52 = vadd.f32 %v4400_v14, %v1980_v42  ;;  %v1442_v22 = vadd.f32 %v1426_v38, %v1389_v51  ;;  %v1123_v54 = vadd.f32 %v1107_v35, %v1070_v40  ;;  %v1214_v43 = vmul.f32 %v3293_v53, %v3754_v8  ;;  %v3866_v51 = vld [vmem:[#allocation2 + $0x99] sm:$0xff] }
 0x198   : > { %v1928_v41 = vadd.f32 %v1912_v57, %v1875_v23  ;;  %v2085_v13 = vadd.f32 %v2069_v2, %v1517_v21  ;;  %v1806_v34 = vmul.f32 %v3361_v28, %v3776_v44  ;;  %v1557_v55 = vmul.f32 %v3324_v7, %v3692_v29 }
 0x199   : > { %v1495_v10 = vadd.f32 %v1479_v47, %v1442_v22  ;;  %v1176_v0 = vadd.f32 %v1160_v24, %v1123_v54  ;;  %v1267_v42 = vmul.f32 %v3299_v56, %v3760_v30  ;;  %v1594_v26 = vmul.f32 %v3329_v9, %v3711_v58  ;;  %v3857_v9 = vld [vmem:[#allocation2 + $0x98] sm:$0xff]  ;;  %v3887_v54 = vld [vmem:[%s4356_s5 + $0x1] ss:$0 sm:$0xff] }
 0x19a   : > { %v2101_v25 = vmul.f32 0.7978846, %v2085_v13  ;;  %v1769_v53 = vadd.f32 %v1753_v45, %v1716_v6  ;;  %v1860_v57 = vmul.f32 %v3373_v39, %v3842_v50  ;;  %v1647_v46 = vmul.f32 %v3337_v15, %v3745_v27  ;;  %v3880_v45 = vld [vmem:[#allocation2 + $0x181] sm:$0xff]  ;;  %v4419_v13 = vld [vmem:[#allocation10_spill] sm:$0xff] }
 0x19b   : > { %v3853_v7 = vadd.f32 %v3398_v11, %v1495_v10  ;;  %v1230_v29 = vadd.f32 %v1214_v43, %v1176_v0  ;;  %v1320_v5 = vmul.f32 %v3307_v62, %v3770_v31  ;;  %v1610_v56 = vadd.f32 %v1594_v26, %v1557_v55  ;;  %v3882_v22 = vld [vmem:[#allocation2 + $0x9a] sm:$0xff]  ;;  %v3900_v55 = vld [vmem:[#allocation2 + $0x182] sm:$0xff] }
 0x19c   : > { %v2862_v38 = vpop.eup %2861  ;;  %v1981_v23 = vadd.f32 %v1965_v1, %v1928_v41  ;;  %2863 = vtanh.f32 %v2101_v25  ;;  %v1701_v58 = vmul.f32 %v3348_v19, %v3788_v37  ;;  %v3861_v12 = vmul.f32 0.5, %v1517_v21  ;;  %v3876_v21 = vld [vmem:[%s4356_s5] ss:$0 sm:$0xff]  ;;  %v3894_v41 = vld [vmem:[%s4356_s5 + $0x2] ss:$0 sm:$0xff] }
 0x19d   : > { %v2132_v33 = vadd.f32 1.0, %v2862_v38  ;;  %v2038_v15 = vmul.f32 0.044715, %v3853_v7  ;;  %v1283_v27 = vadd.f32 %v1267_v42, %v1230_v29  ;;  %v1374_v40 = vmul.f32 %v3314_v3, %v3857_v9  ;;  %v4417_v3 = vld [vmem:[#allocation7_spill] sm:$0xff] }
 0x19e   : > { %v1822_v47 = vadd.f32 %v1806_v34, %v1769_v53  ;;  %v1427_v35 = vmul.f32 %v3319_v4, %v3866_v51  ;;  %v1663_v24 = vadd.f32 %v1647_v46, %v1610_v56  ;;  %v1754_v19 = vmul.f32 %v3353_v20, %v3808_v49  ;;  %v4418_v20 = vld [vmem:[#allocation5_spill] sm:$0xff]  ;;  %v3911_v46 = vld [vmem:[%s4356_s5 + $0x3] ss:$0 sm:$0xff] }
 0x19f   : > { %v2148_v62 = vmul.f32 %v2132_v33, %v2020_v36  ;;  %v2054_v1 = vmul.f32 %v2038_v15, %v3853_v7  ;;  %v1336_v2 = vadd.f32 %v1320_v5, %v1283_v27  ;;  %v1071_v6 = vmul.f32 %v3876_v21, %v4417_v3 }
 0x1a0   : > { %v1717_v4 = vadd.f32 %v1701_v58, %v1663_v24  ;;  %v1108_v43 = vmul.f32 %v3887_v54, %v4418_v20  ;;  %v1913_v34 = vmul.f32 %v4401_v48, %v3880_v45  ;;  %v1480_v42 = vmul.f32 %v3342_v17, %v3882_v22  ;;  %v3922_v58 = vld [vmem:[%s4356_s5 + $0x4] ss:$0 sm:$0xff]  ;;  %v3966_v20 = vld [vmem:[#allocation2 + $0xa8] sm:$0xff] }
 0x1a1   : > { %v2164_v36 = vmul.f32 %v2148_v62, %v2004_v52  ;;  %v1161_v52 = vmul.f32 %v3894_v41, %v4419_v13  ;;  %v2070_v10 = vmul.f32 %v2054_v1, %v3853_v7  ;;  %v1390_v0 = vadd.f32 %v1374_v40, %v1336_v2  ;;  %v3936_v62 = vld [vmem:[%s4356_s5 + $0x11] ss:$0 sm:$0xff] }
 0x1a2   : > { %v1876_v26 = vadd.f32 %v1860_v57, %v1822_v47  ;;  %v1966_v25 = vmul.f32 %v4404_v59, %v3900_v55  ;;  %v1124_v53 = vadd.f32 %v1108_v43, %v1071_v6  ;;  %v1215_v38 = vmul.f32 %v3911_v46, %v3804_v32 }
 0x1a3   : > { %2789 = vmatprep.mubr.msk.f32.mxu0 %vm756_vm3, %v2164_v36  ;;  %v2005_v29 = vadd.f32 %v4400_v14, %v1981_v23  ;;  %v2086_v5 = vadd.f32 %v2070_v10, %v3853_v7  ;;  %v1443_v17 = vadd.f32 %v1427_v35, %v1390_v0  ;;  %v1807_v57 = vmul.f32 %v3361_v28, %v3822_v18  ;;  %v3929_v23 = vld [vmem:[%s4356_s5 + $0x10] ss:$0 sm:$0xff]  ;;  %v3943_v35 = vld [vmem:[%s4356_s5 + $0x12] ss:$0 sm:$0xff]  ;;  %v3974_v10 = vld [vmem:[%s4356_s5 + $0x6] ss:$0 sm:$0xff] }
 0x1a4   : > { %v1770_v56 = vadd.f32 %v1754_v19, %v1717_v4  ;;  %v1177_v33 = vadd.f32 %v1161_v52, %v1124_v53  ;;  %v1268_v15 = vmul.f32 %v3922_v58, %v3810_v16  ;;  %v1558_v27 = vmul.f32 %v3929_v23, %v3728_v61  ;;  %v3950_v19 = vld [vmem:[%s4356_s5 + $0x5] ss:$0 sm:$0xff]  ;;  %v3964_v4 = vld [vmem:[#allocation2 + $0x188] sm:$0xff] }
 0x1a5   : > { %v2102_v40 = vmul.f32 0.7978846, %v2086_v5  ;;  %v1496_v28 = vadd.f32 %v1480_v42, %v1443_v17  ;;  %v1595_v47 = vmul.f32 %v3936_v62, %v3756_v63  ;;  %v1648_v24 = vmul.f32 %v3943_v35, %v3776_v44  ;;  %v3957_v63 = vld [vmem:[%s4356_s5 + $0x13] ss:$0 sm:$0xff]  ;;  %v3980_v53 = vld [vmem:[#allocation2 + $0xa9] sm:$0xff] }
 0x1a6   : > { %v2864_v1 = vpop.eup %2863  ;;  %v1929_v61 = vadd.f32 %v1913_v34, %v1876_v26  ;;  %v1231_v2 = vadd.f32 %v1215_v38, %v1177_v33  ;;  %v1321_v3 = vmul.f32 %v3950_v19, %v3818_v60  ;;  %v1702_v6 = vmul.f32 %v3957_v63, %v3842_v50  ;;  %v3997_v33 = vld [vmem:[#allocation2 + $0xaa] sm:$0xff] }
 0x1a7   : > { %v2133_v44 = vadd.f32 1.0, %v2864_v1  ;;  %2865 = vtanh.f32 %v2102_v40  ;;  %v3962_v36 = vadd.f32 %v3398_v11, %v1496_v28  ;;  %v1611_v43 = vadd.f32 %v1595_v47, %v1558_v27  ;;  %v4001_v40 = vld [vmem:[#allocation2 + $0x189] sm:$0xff] }
 0x1a8   : > { %v2022_v13 = vmul.f32 0.5, %v3853_v7  ;;  %v1861_v52 = vmul.f32 %v3373_v39, %v3964_v4  ;;  %v1284_v34 = vadd.f32 %v1268_v15, %v1231_v2  ;;  %v1375_v11 = vmul.f32 %v3974_v10, %v3966_v20  ;;  %v3985_v39 = vld [vmem:[%s4356_s5 + $0x7] ss:$0 sm:$0xff]  ;;  %v4003_v28 = vld [vmem:[#allocation2 + $0x18a] sm:$0xff] }
 0x1a9   : > { %v2149_v0 = vmul.f32 %v2133_v44, %v3861_v12  ;;  %v1823_v42 = vadd.f32 %v1807_v57, %v1770_v56  ;;  %v2039_v26 = vmul.f32 0.044715, %v3962_v36  ;;  %v1664_v7 = vadd.f32 %v1648_v24, %v1611_v43  ;;  %v3992_v12 = vld [vmem:[%s4356_s5 + $0x14] ss:$0 sm:$0xff]  ;;  %v4008_v24 = vld [vmem:[%s4356_s5 + $0x8] ss:$0 sm:$0xff] }
 0x1aa   : > { %v1982_v38 = vadd.f32 %v1966_v25, %v1929_v61  ;;  %v1337_v5 = vadd.f32 %v1321_v3, %v1284_v34  ;;  %v1428_v17 = vmul.f32 %v3985_v39, %v3980_v53  ;;  %v1755_v57 = vmul.f32 %v3992_v12, %v3880_v45 }
 0x1ab   : > { %v2165_v56 = vmul.f32 %v2149_v0, %v2005_v29  ;;  %v2055_v25 = vmul.f32 %v2039_v26, %v3962_v36  ;;  %v1718_v15 = vadd.f32 %v1702_v6, %v1664_v7  ;;  %v1072_v27 = vmul.f32 %v3876_v21, %v3754_v8 }
 0x1ac   : > { %v1391_v47 = vadd.f32 %v1375_v11, %v1337_v5  ;;  %v1481_v29 = vmul.f32 %v4008_v24, %v3997_v33  ;;  %v1109_v1 = vmul.f32 %v3887_v54, %v3760_v30  ;;  %v1162_v61 = vmul.f32 %v3894_v41, %v3770_v31 }
 0x1ad   : > { %2790 = vmatmul.mubr.msk.f32.gmra.mrb[18].mxu0 %vm756_vm3, %v2165_v56  ;;  %v1877_v8 = vadd.f32 %v1861_v52, %v1823_v42  ;;  %v1914_v2 = vmul.f32 %v4401_v48, %v4001_v40  ;;  %v1967_v3 = vmul.f32 %v4404_v59, %v4003_v28  ;;  %v2071_v6 = vmul.f32 %v2055_v25, %v3962_v36  ;;  %v4029_v52 = vld [vmem:[%s4356_s5 + $0x15] ss:$0 sm:$0xff] }
 0x1ae   : > { %v2006_v44 = vadd.f32 %v4400_v14, %v1982_v38  ;;  %v1444_v43 = vadd.f32 %v1428_v17, %v1391_v47  ;;  %v1125_v34 = vadd.f32 %v1109_v1, %v1072_v27  ;;  %v1216_v30 = vmul.f32 %v3911_v46, %v3857_v9  ;;  %v4049_v27 = vld [vmem:[#allocation2 + $0x198] sm:$0xff]  ;;  %v4054_v1 = vld [vmem:[%s4356_s5 + $0x16] ss:$0 sm:$0xff] }
 0x1af   : > { %v2087_v31 = vadd.f32 %v2071_v6, %v3962_v36  ;;  %v1771_v11 = vadd.f32 %v1755_v57, %v1718_v15  ;;  %v1808_v48 = vmul.f32 %v4029_v52, %v3900_v55  ;;  %v1269_v59 = vmul.f32 %v3922_v58, %v3866_v51  ;;  %v4046_v15 = vld [vmem:[%s4357_s6] ss:$0 sm:$0xff] }
 0x1b0   : > { %v1497_v0 = vadd.f32 %v1481_v29, %v1444_v43  ;;  %v1178_v42 = vadd.f32 %v1162_v61, %v1125_v34  ;;  %v1559_v26 = vmul.f32 %v3929_v23, %v3788_v37  ;;  %v1596_v7 = vmul.f32 %v3936_v62, %v3808_v49  ;;  %v4058_v61 = vld [vmem:[#allocation2 + $0xb0] sm:$0xff] }
 0x1b1   : > { %v2866_v38 = vpop.eup %2865  ;;  %v1930_v5 = vadd.f32 %v1914_v2, %v1877_v8  ;;  %v2103_v17 = vmul.f32 0.7978846, %v2087_v31  ;;  %v1322_v57 = vmul.f32 %v3950_v19, %v3882_v22  ;;  %v1649_v56 = vmul.f32 %v3943_v35, %v3822_v18  ;;  %v4063_v31 = vld [vmem:[#allocation2 + $0xb1] sm:$0xff] }
 0x1b2   : > { %v2134_v25 = vadd.f32 1.0, %v2866_v38  ;;  %v1520_v37 = vadd.f32 %v4046_v15, %v1497_v0  ;;  %v1232_v49 = vadd.f32 %v1216_v30, %v1178_v42  ;;  %v1612_v47 = vadd.f32 %v1596_v7, %v1559_v26  ;;  %v4067_v42 = vld [vmem:[#allocation2 + $0x199] sm:$0xff] }
 0x1b3   : > { %2867 = vtanh.f32 %v2103_v17  ;;  %v1824_v29 = vadd.f32 %v1808_v48, %v1771_v11  ;;  %v1862_v18 = vmul.f32 %v4054_v1, %v4049_v27  ;;  %v1376_v43 = vmul.f32 %v3974_v10, %v4058_v61  ;;  %v4078_v38 = vld [vmem:[#allocation2 + $0xb2] sm:$0xff] }
 0x1b4   : > { %v2150_v8 = vmul.f32 %v2134_v25, %v2022_v13  ;;  %v2040_v2 = vmul.f32 0.044715, %v1520_v37  ;;  %v1285_v6 = vadd.f32 %v1269_v59, %v1232_v49  ;;  %v1983_v34 = vadd.f32 %v1967_v3, %v1930_v5  ;;  %v4074_v3 = vld [vmem:[%s4356_s5 + $0x17] ss:$0 sm:$0xff]  ;;  %v4089_v49 = vld [vmem:[#allocation2 + $0x19a] sm:$0xff] }
 0x1b5   : > { %v2023_v30 = vmul.f32 0.5, %v3962_v36  ;;  %v1665_v11 = vadd.f32 %v1649_v56, %v1612_v47  ;;  %v1703_v48 = vmul.f32 %v3957_v63, %v3964_v4  ;;  %v1429_v13 = vmul.f32 %v3985_v39, %v4063_v31 }
 0x1b6   : > { %v2166_v0 = vmul.f32 %v2150_v8, %v2006_v44  ;;  %v2056_v26 = vmul.f32 %v2040_v2, %v1520_v37  ;;  %v1338_v7 = vadd.f32 %v1322_v57, %v1285_v6  ;;  %v1878_v59 = vadd.f32 %v1862_v18, %v1824_v29  ;;  %v4099_v8 = vld [vmem:[%s4356_s5 + $0x18] ss:$0 sm:$0xff] }
 0x1b7   : > { %v1915_v36 = vmul.f32 %v4074_v3, %v4067_v42  ;;  %v1073_v44 = vmul.f32 %v3876_v21, %v3804_v32  ;;  %v1110_v5 = vmul.f32 %v3887_v54, %v3810_v16  ;;  %v1482_v56 = vmul.f32 %v4008_v24, %v4078_v38 }
 0x1b8   : > { %2792 = vmatprep.mubr.msk.f32.mxu0 %vm756_vm3, %v2166_v0  ;;  %v2072_v17 = vmul.f32 %v2056_v26, %v1520_v37  ;;  %v1392_v57 = vadd.f32 %v1376_v43, %v1338_v7  ;;  %v1163_v25 = vmul.f32 %v3894_v41, %v3818_v60  ;;  %v1719_v47 = vadd.f32 %v1703_v48, %v1665_v11 }
 0x1b9   : > { %v1756_v29 = vmul.f32 %v3992_v12, %v4001_v40  ;;  %v1126_v32 = vadd.f32 %v1110_v5, %v1073_v44  ;;  %v1217_v16 = vmul.f32 %v3911_v46, %v3966_v20  ;;  %v2007_v18 = vadd.f32 %v4400_v14, %v1983_v34 }
 0x1ba   : > { %v1968_v60 = vmul.f32 %v4099_v8, %v4089_v49  ;;  %v2088_v2 = vadd.f32 %v2072_v17, %v1520_v37  ;;  %v1445_v6 = vadd.f32 %v1429_v13, %v1392_v57  ;;  %v1931_v43 = vadd.f32 %v1915_v36, %v1878_v59  ;;  %v4118_v57 = vld [vmem:[#allocation2 + $0xc0] sm:$0xff] }
 0x1bb   : > { %v1179_v11 = vadd.f32 %v1163_v25, %v1126_v32  ;;  %v1270_v48 = vmul.f32 %v3922_v58, %v3980_v53  ;;  %v1560_v0 = vmul.f32 %v3929_v23, %v3842_v50  ;;  %v1597_v34 = vmul.f32 %v3936_v62, %v3880_v45 }
 0x1bc   : > { %v2104_v26 = vmul.f32 0.7978846, %v2088_v2  ;;  %v1498_v14 = vadd.f32 %v1482_v56, %v1445_v6  ;;  %v1650_v7 = vmul.f32 %v3943_v35, %v3900_v55  ;;  %v1772_v5 = vadd.f32 %v1756_v29, %v1719_v47  ;;  %v4122_v29 = vld [vmem:[#allocation2 + $0x1a0] sm:$0xff] }
 0x1bd   : > { %v2868_v44 = vpop.eup %2867  ;;  %v1809_v13 = vmul.f32 %v4029_v52, %v4003_v28  ;;  %v1233_v59 = vadd.f32 %v1217_v16, %v1179_v11  ;;  %v1323_v36 = vmul.f32 %v3950_v19, %v3997_v33  ;;  %v1613_v45 = vadd.f32 %v1597_v34, %v1560_v0  ;;  %v4125_v16 = vld [vmem:[#allocation2 + $0xc1] sm:$0xff] }
 0x1be   : > { %v2135_v17 = vadd.f32 1.0, %v2868_v44  ;;  %2869 = vtanh.f32 %v2104_v26  ;;  %v4116_v50 = vadd.f32 %v4046_v15, %v1498_v14  ;;  %v2024_v56 = vmul.f32 0.5, %v1520_v37  ;;  %v4134_v34 = vld [vmem:[#allocation2 + $0xc2] sm:$0xff] }
 0x1bf   : > { %v1286_v25 = vadd.f32 %v1270_v48, %v1233_v59  ;;  %v1377_v55 = vmul.f32 %v3974_v10, %v4118_v57  ;;  %v1666_v2 = vadd.f32 %v1650_v7, %v1613_v45  ;;  %v1704_v6 = vmul.f32 %v3957_v63, %v4049_v27  ;;  %v4138_v44 = vld [vmem:[#allocation2 + $0x1a1] sm:$0xff] }
 0x1c0   : > { %v2151_v47 = vmul.f32 %v2135_v17, %v2023_v30  ;;  %v2041_v32 = vmul.f32 0.044715, %v4116_v50  ;;  %v1984_v11 = vadd.f32 %v1968_v60, %v1931_v43  ;;  %v1863_v0 = vmul.f32 %v4054_v1, %v4122_v29  ;;  %v4155_v17 = vld [vmem:[%s4357_s6 + $0x1] ss:$0 sm:$0xff] }
 0x1c1   : > { %v1339_v37 = vadd.f32 %v1323_v36, %v1286_v25  ;;  %v1430_v48 = vmul.f32 %v3985_v39, %v4125_v16  ;;  %v1825_v30 = vadd.f32 %v1809_v13, %v1772_v5  ;;  %v1074_v7 = vmul.f32 %v3876_v21, %v3857_v9 }
 0x1c2   : > { %v2167_v26 = vmul.f32 %v2151_v47, %v2007_v18  ;;  %v2057_v14 = vmul.f32 %v2041_v32, %v4116_v50  ;;  %v1483_v60 = vmul.f32 %v4008_v24, %v4134_v34  ;;  %v1111_v43 = vmul.f32 %v3887_v54, %v3866_v51 }
 0x1c3   : > { %v1393_v59 = vadd.f32 %v1377_v55, %v1339_v37  ;;  %v1164_v18 = vmul.f32 %v3894_v41, %v3882_v22  ;;  %v1916_v5 = vmul.f32 %v4074_v3, %v4138_v44  ;;  %v1720_v9 = vadd.f32 %v1704_v6, %v1666_v2 }
 0x1c4   : > { %2793 = vmatmul.mubr.msk.f32.gmra.mrb[20].mxu0 %vm756_vm3, %v2167_v26  ;;  %v2073_v13 = vmul.f32 %v2057_v14, %v4116_v50  ;;  %v1757_v36 = vmul.f32 %v3992_v12, %v4067_v42  ;;  %v2008_v51 = vadd.f32 %v4155_v17, %v1984_v11  ;;  %v1127_v22 = vadd.f32 %v1111_v43, %v1074_v7  ;;  %v4173_v43 = vld [vmem:[#allocation2 + $0x1a2] sm:$0xff] }
 0x1c5   : > { %v1446_v45 = vadd.f32 %v1430_v48, %v1393_v59  ;;  %v1218_v25 = vmul.f32 %v3911_v46, %v4058_v61  ;;  %v1879_v55 = vadd.f32 %v1863_v0, %v1825_v30  ;;  %v1810_v32 = vmul.f32 %v4029_v52, %v4089_v49 }
 0x1c6   : > { %v2089_v47 = vadd.f32 %v2073_v13, %v4116_v50  ;;  %v1271_v2 = vmul.f32 %v3922_v58, %v4063_v31  ;;  %v1180_v37 = vadd.f32 %v1164_v18, %v1127_v22  ;;  %v1561_v26 = vmul.f32 %v3929_v23, %v3964_v4 }
 0x1c7   : > { %v1499_v6 = vadd.f32 %v1483_v60, %v1446_v45  ;;  %v1598_v11 = vmul.f32 %v3936_v62, %v4001_v40  ;;  %v1773_v7 = vadd.f32 %v1757_v36, %v1720_v9  ;;  %v1324_v0 = vmul.f32 %v3950_v19, %v4078_v38  ;;  %v4180_v9 = vld [vmem:[#allocation2 + $0xc8] sm:$0xff]  ;;  %v4182_v45 = vld [vmem:[#allocation2 + $0x1b0] sm:$0xff] }
 0x1c8   : > { %v2870_v48 = vpop.eup %2869  ;;  %v2105_v14 = vmul.f32 0.7978846, %v2089_v47  ;;  %v1651_v30 = vmul.f32 %v3943_v35, %v4003_v28  ;;  %v1234_v18 = vadd.f32 %v1218_v25, %v1180_v37  ;;  %v1932_v13 = vadd.f32 %v1916_v5, %v1879_v55 }
 0x1c9   : > { %v2136_v59 = vadd.f32 1.0, %v2870_v48  ;;  %v4176_v60 = vadd.f32 %v4046_v15, %v1499_v6  ;;  %v1614_v4 = vadd.f32 %v1598_v11, %v1561_v26  ;;  %v1969_v40 = vmul.f32 %v4099_v8, %v4173_v43  ;;  %v4187_v6 = vld [vmem:[#allocation2 + $0xc9] sm:$0xff] }
 0x1ca   : > { %2871 = vtanh.f32 %v2105_v14  ;;  %v1287_v22 = vadd.f32 %v1271_v2, %v1234_v18  ;;  %v1378_v47 = vmul.f32 %v3974_v10, %v4180_v9  ;;  %v1826_v25 = vadd.f32 %v1810_v32, %v1773_v7  ;;  %v4204_v18 = vld [vmem:[#allocation2 + $0x1b1] sm:$0xff] }
 0x1cb   : > { %v2152_v36 = vmul.f32 %v2136_v59, %v2024_v56  ;;  %v2042_v28 = vmul.f32 0.044715, %v4176_v60  ;;  %v1864_v5 = vmul.f32 %v4054_v1, %v4182_v45  ;;  %v1431_v55 = vmul.f32 %v3985_v39, %v4187_v6  ;;  %v4197_v59 = vld [vmem:[#allocation2 + $0xca] sm:$0xff] }
 0x1cc   : > { %v1705_v56 = vmul.f32 %v3957_v63, %v4122_v29  ;;  %v1340_v11 = vadd.f32 %v1324_v0, %v1287_v22  ;;  %v1667_v2 = vadd.f32 %v1651_v30, %v1614_v4  ;;  %v1985_v48 = vadd.f32 %v1969_v40, %v1932_v13  ;;  %v4215_v13 = vld [vmem:[#allocation2 + $0x1b2] sm:$0xff] }
 0x1cd   : > { %v2168_v37 = vmul.f32 %v2152_v36, %v2008_v51  ;;  %v2058_v26 = vmul.f32 %v2042_v28, %v4176_v60  ;;  %v2025_v14 = vmul.f32 0.5, %v4116_v50  ;;  %v1075_v32 = vmul.f32 %v3876_v21, %v3966_v20 }
 0x1ce   : > { %v1112_v7 = vmul.f32 %v3887_v54, %v3980_v53  ;;  %v1394_v36 = vadd.f32 %v1378_v47, %v1340_v11  ;;  %v1484_v0 = vmul.f32 %v4008_v24, %v4197_v59  ;;  %v1165_v50 = vmul.f32 %v3894_v41, %v3997_v33  ;;  %v1358_v11 = vld [vmem:[#allocation2 + $0xd8] sm:$0xff] }
 0x1cf   : > { %2795 = vmatprep.mubr.msk.f32.mxu0 %vm756_vm3, %v2168_v37  ;;  %v2074_v51 = vmul.f32 %v2058_v26, %v4176_v60  ;;  %v1880_v30 = vadd.f32 %v1864_v5, %v1826_v25  ;;  %v1917_v20 = vmul.f32 %v4074_v3, %v4204_v18  ;;  %v1219_v53 = vmul.f32 %v3911_v46, %v4118_v57 }
 0x1d0   : > { %v1128_v4 = vadd.f32 %v1112_v7, %v1075_v32  ;;  %v1447_v28 = vadd.f32 %v1431_v55, %v1394_v36  ;;  %v1721_v22 = vadd.f32 %v1705_v56, %v1667_v2  ;;  %v1758_v47 = vmul.f32 %v3992_v12, %v4138_v44 }
 0x1d1   : > { %v2090_v40 = vadd.f32 %v2074_v51, %v4176_v60  ;;  %v2009_v37 = vadd.f32 %v4155_v17, %v1985_v48  ;;  %v1970_v33 = vmul.f32 %v4099_v8, %v4215_v13  ;;  %v1272_v5 = vmul.f32 %v3922_v58, %v4125_v16 }
 0x1d2   : > { %v1181_v25 = vadd.f32 %v1165_v50, %v1128_v4  ;;  %v1500_v57 = vadd.f32 %v1484_v0, %v1447_v28  ;;  %v1562_v32 = vmul.f32 %v3929_v23, %v4049_v27  ;;  %v1599_v55 = vmul.f32 %v3936_v62, %v4067_v42  ;;  %v1411_v50 = vld [vmem:[#allocation2 + $0xd9] sm:$0xff] }
 0x1d3   : > { %v2106_v26 = vmul.f32 0.7978846, %v2090_v40  ;;  %v1933_v2 = vadd.f32 %v1917_v20, %v1880_v30  ;;  %v1811_v48 = vmul.f32 %v4029_v52, %v4173_v43  ;;  %v1325_v51 = vmul.f32 %v3950_v19, %v4134_v34  ;;  %v4237_v40 = vld [vmem:[#allocation2 + $0x1b8] sm:$0xff] }
 0x1d4   : > { %v2872_v56 = vpop.eup %2871  ;;  %v1235_v7 = vadd.f32 %v1219_v53, %v1181_v25  ;;  %v4234_v16 = vadd.f32 %v4046_v15, %v1500_v57  ;;  %v1774_v0 = vadd.f32 %v1758_v47, %v1721_v22  ;;  %v1379_v4 = vmul.f32 %v3974_v10, %v1358_v11  ;;  %v1464_v20 = vld [vmem:[#allocation2 + $0xda] sm:$0xff] }
 0x1d5   : > { %v2137_v36 = vadd.f32 1.0, %v2872_v56  ;;  %2873 = vtanh.f32 %v2106_v26  ;;  %v1615_v53 = vadd.f32 %v1599_v55, %v1562_v32  ;;  %v1652_v34 = vmul.f32 %v3943_v35, %v4089_v49 }
 0x1d6   : > { %v1288_v27 = vadd.f32 %v1272_v5, %v1235_v7  ;;  %v2043_v30 = vmul.f32 0.044715, %v4234_v16  ;;  %v1986_v28 = vadd.f32 %v1970_v33, %v1933_v2  ;;  %v1865_v25 = vmul.f32 %v4054_v1, %v4237_v40 }
 0x1d7   : > { %v2153_v42 = vmul.f32 %v2137_v36, %v2025_v14  ;;  %v1432_v22 = vmul.f32 %v3985_v39, %v1411_v50  ;;  %v1827_v5 = vadd.f32 %v1811_v48, %v1774_v0  ;;  %v1076_v57 = vmul.f32 %v3876_v21, %v4058_v61  ;;  %v1897_v21 = vld [vmem:[#allocation2 + $0x1b9] sm:$0xff] }
 0x1d8   : > { %v1341_v26 = vadd.f32 %v1325_v51, %v1288_v27  ;;  %v2059_v14 = vmul.f32 %v2043_v30, %v4234_v16  ;;  %v1485_v32 = vmul.f32 %v4008_v24, %v1464_v20  ;;  %v1113_v49 = vmul.f32 %v3887_v54, %v4063_v31  ;;  %v1950_v30 = vld [vmem:[#allocation2 + $0x1ba] sm:$0xff] }
 0x1d9   : > { %v2169_v47 = vmul.f32 %v2153_v42, %v2009_v37  ;;  %v1166_v33 = vmul.f32 %v3894_v41, %v4078_v38  ;;  %v1668_v37 = vadd.f32 %v1652_v34, %v1615_v53  ;;  %v1706_v56 = vmul.f32 %v3957_v63, %v4182_v45 }
 0x1da   : > { %v1395_v11 = vadd.f32 %v1379_v4, %v1341_v26  ;;  %v2075_v55 = vmul.f32 %v2059_v14, %v4234_v16  ;;  %v2026_v2 = vmul.f32 0.5, %v4176_v60  ;;  %v1129_v48 = vadd.f32 %v1113_v49, %v1076_v57  ;;  %v1359_v4 = vld [vmem:[#allocation2 + $0xe0] sm:$0xff] }
 0x1db   : > { %2796 = vmatmul.mubr.msk.f32.gmra.mrb[22].mxu0 %vm756_vm3, %v2169_v47  ;;  %v1220_v7 = vmul.f32 %v3911_v46, %v4180_v9  ;;  %v2010_v54 = vadd.f32 %v4155_v17, %v1986_v28  ;;  %v1881_v31 = vadd.f32 %v1865_v25, %v1827_v5  ;;  %v1918_v41 = vmul.f32 %v4074_v3, %v1897_v21 }
 0x1dc   : > { %v1448_v61 = vadd.f32 %v1432_v22, %v1395_v11  ;;  %v2091_v38 = vadd.f32 %v2075_v55, %v4234_v16  ;;  %v1759_v36 = vmul.f32 %v3992_v12, %v4204_v18  ;;  %v1182_v45 = vadd.f32 %v1166_v33, %v1129_v48 }
 0x1dd   : > { %v1273_v60 = vmul.f32 %v3922_v58, %v4187_v6  ;;  %v1722_v27 = vadd.f32 %v1706_v56, %v1668_v37  ;;  %v1563_v46 = vmul.f32 %v3929_v23, %v4122_v29  ;;  %v1600_v9 = vmul.f32 %v3936_v62, %v4138_v44  ;;  %v1412_v6 = vld [vmem:[#allocation2 + $0xe1] sm:$0xff] }
 0x1de   : > { %v1501_v51 = vadd.f32 %v1485_v32, %v1448_v61  ;;  %v2107_v50 = vmul.f32 0.7978846, %v2091_v38  ;;  %v1236_v53 = vadd.f32 %v1220_v7, %v1182_v45  ;;  %v1326_v18 = vmul.f32 %v3950_v19, %v4197_v59  ;;  %v1465_v44 = vld [vmem:[#allocation2 + $0xe2] sm:$0xff] }
 0x1df   : > { %v2874_v0 = vpop.eup %2873  ;;  %v1934_v34 = vadd.f32 %v1918_v41, %v1881_v31  ;;  %v1971_v58 = vmul.f32 %v4099_v8, %v1950_v30  ;;  %v1380_v23 = vmul.f32 %v3974_v10, %v1359_v4  ;;  %v1775_v29 = vadd.f32 %v1759_v36, %v1722_v27  ;;  %v1845_v59 = vld [vmem:[#allocation2 + $0x1c8] sm:$0xff]  ;;  %v1846_v27 = vld [vmem:[#allocation2 + $0x1d0] sm:$0xff] }
 0x1e0   : > { %v2138_v42 = vadd.f32 1.0, %v2874_v0  ;;  %v1524_v20 = vadd.f32 %v4046_v15, %v1501_v51  ;;  %2875 = vtanh.f32 %v2107_v50  ;;  %v1289_v26 = vadd.f32 %v1273_v60, %v1236_v53  ;;  %v1951_v51 = vld [vmem:[#allocation2 + $0x1ca] sm:$0xff] }
 0x1e1   : > { %v1812_v62 = vmul.f32 %v4029_v52, %v4215_v13  ;;  %v1616_v22 = vadd.f32 %v1600_v9, %v1563_v46  ;;  %v1653_v47 = vmul.f32 %v3943_v35, %v4173_v43  ;;  %v1433_v57 = vmul.f32 %v3985_v39, %v1412_v6  ;;  %v1898_v43 = vld [vmem:[#allocation2 + $0x1c9] sm:$0xff] }
 0x1e2   : > { %v2154_v28 = vmul.f32 %v2138_v42, %v2026_v2  ;;  %v2044_v25 = vmul.f32 0.044715, %v1524_v20  ;;  %v1342_v14 = vadd.f32 %v1326_v18, %v1289_v26  ;;  %v1486_v10 = vmul.f32 %v4008_v24, %v1465_v44  ;;  %v1899_v42 = vld [vmem:[#allocation2 + $0x1d1] sm:$0xff] }
 0x1e3   : > { %v1828_v49 = vadd.f32 %v1812_v62, %v1775_v29  ;;  %v1866_v13 = vmul.f32 %v4054_v1, %v1845_v59  ;;  %v1669_v33 = vadd.f32 %v1653_v47, %v1616_v22  ;;  %v1707_v55 = vmul.f32 %v3957_v63, %v4237_v40 }
 0x1e4   : > { %v2170_v19 = vmul.f32 %v2154_v28, %v2010_v54  ;;  %v2060_v5 = vmul.f32 %v2044_v25, %v1524_v20  ;;  %v1396_v32 = vadd.f32 %v1380_v23, %v1342_v14  ;;  %v1987_v35 = vadd.f32 %v1971_v58, %v1934_v34 }
 0x1e5   : > { %v2027_v2 = vmul.f32 0.5, %v4234_v16  ;;  %v1882_v7 = vadd.f32 %v1866_v13, %v1828_v49  ;;  %v1919_v54 = vmul.f32 %v4074_v3, %v1898_v43  ;;  %v1723_v24 = vadd.f32 %v1707_v55, %v1669_v33 }
 0x1e6   : > { %2798 = vmatprep.mubr.msk.f32.mxu0 %vm756_vm3, %v2170_v19  ;;  %v2076_v11 = vmul.f32 %v2060_v5, %v1524_v20  ;;  %v1449_v56 = vadd.f32 %v1433_v57, %v1396_v32  ;;  %v1760_v31 = vmul.f32 %v3992_v12, %v1897_v21  ;;  %v2011_v41 = vadd.f32 %v4155_v17, %v1987_v35  ;;  %v2636_v19 = vld [vmem:[%s4359_s8] ss:$0 sm:$0xff] }
 0x1e7   : > { %v1935_v45 = vadd.f32 %v1919_v54, %v1882_v7  ;;  %v1972_v16 = vmul.f32 %v4099_v8, %v1951_v51  ;;  %v1813_v0 = vmul.f32 %v4029_v52, %v1950_v30  ;;  %v1867_v9 = vmul.f32 %v4054_v1, %v1846_v27  ;;  %v1952_v30 = vld [vmem:[#allocation2 + $0x1d2] sm:$0xff] }
 0x1e8   : > { %v2092_v37 = vadd.f32 %v2076_v11, %v1524_v20  ;;  %v1502_v61 = vadd.f32 %v1486_v10, %v1449_v56  ;;  %v1776_v60 = vadd.f32 %v1760_v31, %v1723_v24  ;;  %v2028_v53 = vmul.f32 0.5, %v1524_v20 }
 0x1e9   : > { %v1988_v21 = vadd.f32 %v1972_v16, %v1935_v45  ;;  %v1920_v52 = vmul.f32 %v4074_v3, %v1899_v42  ;;  %v1973_v29 = vmul.f32 %v4099_v8, %v1952_v30 }
 0x1ea   : > { %v2108_v39 = vmul.f32 0.7978846, %v2092_v37  ;;  %v2876_v48 = vpop.eup %2875  ;;  %v1525_v63 = vadd.f32 %v4046_v15, %v1502_v61  ;;  %v1829_v46 = vadd.f32 %v1813_v0, %v1776_v60 }
 0x1eb   : > { %v2139_v38 = vadd.f32 1.0, %v2876_v48  ;;  %v2012_v58 = vadd.f32 %v4155_v17, %v1988_v21 }
 0x1ec   : > { %2877 = vtanh.f32 %v2108_v39  ;;  %v2045_v36 = vmul.f32 0.044715, %v1525_v63  ;;  %v1883_v28 = vadd.f32 %v1867_v9, %v1829_v46  ;;  %v2029_v20 = vmul.f32 0.5, %v1525_v63 }
 0x1ed   : > { %v2155_v40 = vmul.f32 %v2139_v38, %v2027_v2 }
 0x1ee   : > { %v2061_v4 = vmul.f32 %v2045_v36, %v1525_v63  ;;  %v1936_v23 = vadd.f32 %v1920_v52, %v1883_v28 }
 0x1ef   : > { %v2171_v50 = vmul.f32 %v2155_v40, %v2011_v41 }
 0x1f0   : > { %v2077_v12 = vmul.f32 %v2061_v4, %v1525_v63  ;;  %v1989_v1 = vadd.f32 %v1973_v29, %v1936_v23 }
 0x1f1   : > { %2799 = vmatmul.mubr.msk.f32.gmra.mrb[24].mxu0 %vm756_vm3, %v2171_v50 }
 0x1f2   : > { %v2093_v15 = vadd.f32 %v2077_v12, %v1525_v63  ;;  %v2013_v44 = vadd.f32 %v4155_v17, %v1989_v1 }
 0x1f4   : > { %v2109_v34 = vmul.f32 0.7978846, %v2093_v15 }
 0x1f6   : > { %v2878_v18 = vpop.eup %2877  ;;  %2879 = vtanh.f32 %v2109_v34 }
 0x1f7   : > { %v2140_v6 = vadd.f32 1.0, %v2878_v18 }
 0x1f9   : > { %v2156_v25 = vmul.f32 %v2140_v6, %v2028_v53 }
 0x1fb   : > { %v2172_v26 = vmul.f32 %v2156_v25, %v2012_v58 }
 0x1fd   : > { %2801 = vmatprep.mubr.msk.f32.mxu0 %vm756_vm3, %v2172_v26 }
 0x200   : > { %v2880_v62 = vpop.eup %2879 }
 0x201   : > { %v2141_v22 = vadd.f32 1.0, %v2880_v62 }
 0x203   : > { %v2157_v3 = vmul.f32 %v2141_v22, %v2029_v20 }
 0x205   : > { %v2173_v47 = vmul.f32 %v2157_v3, %v2013_v44 }
 0x207   : > { %2802 = vmatmul.mubr.msk.f32.gmra.mrb[26].mxu0 %vm756_vm3, %v2173_v47 }
 0x243   : > { %v2782_v8 = vpop.f32.mrb[12].mxu0 }
 0x244   : > { %v2302_v59 = vadd.f32 %v2782_v8, %v2636_v19  ;;  %v2296_v5 = vpop.f32.mrb[13].mxu0 }
 0x245   : > { %v2297_v14 = vadd.f32 %v2636_v19, %v2296_v5 }
 0x246   : > { %2376 = vst.msk [vmem:[%s3051_s10 + $0x8] sm:$0xff] %vm526_vm1, %v2302_v59 }
 0x247   : > { %2375 = vst.msk [vmem:[%s3051_s10] sm:$0xff] %vm526_vm1, %v2297_v14 }
 0x253   : > { %v2785_v17 = vpop.f32.mrb[14].mxu0 }
 0x254   : > { %v2312_v57 = vadd.f32 %v2785_v17, %v2636_v19  ;;  %v2306_v11 = vpop.f32.mrb[15].mxu0 }
 0x255   : > { %v2307_v32 = vadd.f32 %v2636_v19, %v2306_v11 }
 0x256   : > { %2378 = vst.msk [vmem:[%s3051_s10 + $0x18] sm:$0xff] %vm526_vm1, %v2312_v57 }
 0x257   : > { %2377 = vst.msk [vmem:[%s3051_s10 + $0x10] sm:$0xff] %vm526_vm1, %v2307_v32 }
 0x269   : > { %v2788_v10 = vpop.f32.mrb[16].mxu0 }
 0x26a   : > { %v2322_v49 = vadd.f32 %v2788_v10, %v2636_v19  ;;  %v2316_v13 = vpop.f32.mrb[17].mxu0 }
 0x26b   : > { %v2317_v33 = vadd.f32 %v2636_v19, %v2316_v13 }
 0x26c   : > { %2380 = vst.msk [vmem:[%s3051_s10 + $0x28] sm:$0xff] %vm526_vm1, %v2322_v49 }
 0x26d   : > { %2379 = vst.msk [vmem:[%s3051_s10 + $0x20] sm:$0xff] %vm526_vm1, %v2317_v33 }
 0x280   : > { %v2791_v55 = vpop.f32.mrb[18].mxu0 }
 0x281   : > { %v2332_v35 = vadd.f32 %v2791_v55, %v2636_v19  ;;  %v2326_v43 = vpop.f32.mrb[19].mxu0 }
 0x282   : > { %v2327_v37 = vadd.f32 %v2636_v19, %v2326_v43 }
 0x283   : > { %2382 = vst.msk [vmem:[%s3051_s10 + $0x38] sm:$0xff] %vm526_vm1, %v2332_v35 }
 0x284   : > { %2381 = vst.msk [vmem:[%s3051_s10 + $0x30] sm:$0xff] %vm526_vm1, %v2327_v37 }
 0x297   : > { %v2794_v56 = vpop.f32.mrb[20].mxu0 }
 0x298   : > { %v2342_v2 = vadd.f32 %v2794_v56, %v2636_v19  ;;  %v2336_v39 = vpop.f32.mrb[21].mxu0 }
 0x299   : > { %v2337_v61 = vadd.f32 %v2636_v19, %v2336_v39 }
 0x29a   : > { %2384 = vst.msk [vmem:[%s3051_s10 + $0x48] sm:$0xff] %vm526_vm1, %v2342_v2 }
 0x29b   : > { %2383 = vst.msk [vmem:[%s3051_s10 + $0x40] sm:$0xff] %vm526_vm1, %v2337_v61 }
 0x2ae   : > { %v2797_v48 = vpop.f32.mrb[22].mxu0 }
 0x2af   : > { %v2352_v7 = vadd.f32 %v2797_v48, %v2636_v19  ;;  %v2346_v54 = vpop.f32.mrb[23].mxu0 }
 0x2b0   : > { %v2347_v24 = vadd.f32 %v2636_v19, %v2346_v54 }
 0x2b1   : > { %2386 = vst.msk [vmem:[%s3051_s10 + $0x58] sm:$0xff] %vm526_vm1, %v2352_v7 }
 0x2b2   : > { %2385 = vst.msk [vmem:[%s3051_s10 + $0x50] sm:$0xff] %vm526_vm1, %v2347_v24 }
 0x2c4   : > { %v2800_v31 = vpop.f32.mrb[24].mxu0 }
 0x2c5   : > { %v2362_v41 = vadd.f32 %v2800_v31, %v2636_v19  ;;  %v2356_v38 = vpop.f32.mrb[25].mxu0 }
 0x2c6   : > { %v2357_v51 = vadd.f32 %v2636_v19, %v2356_v38 }
 0x2c7   : > { %2388 = vst.msk [vmem:[%s3051_s10 + $0x68] sm:$0xff] %vm526_vm1, %v2362_v41 }
 0x2c8   : > { %2387 = vst.msk [vmem:[%s3051_s10 + $0x60] sm:$0xff] %vm526_vm1, %v2357_v51 }
 0x2da   : > { %v2803_v63 = vpop.f32.mrb[26].mxu0 }
 0x2db   : > { %v2372_v40 = vadd.f32 %v2803_v63, %v2636_v19  ;;  %v2366_v36 = vpop.f32.mrb[27].mxu0 }
 0x2dc   : > { %v2367_v45 = vadd.f32 %v2636_v19, %v2366_v36 }
 0x2dd   : > { %2390 = vst.msk [vmem:[%s3051_s10 + $0x78] sm:$0xff] %vm526_vm1, %v2372_v40 }
 0x2de   : > { %2389 = vst.msk [vmem:[%s3051_s10 + $0x70] sm:$0xff] %vm526_vm1, %v2367_v45 }
 0x2df PF: > { %s19_s13 = sadd.s32 1, %s2939_s13   ;;  %s4420_s30 = smov %s2931_s11 }
 0x2e0   : > { %p16_p13 = scmp.ge.s32.totalorder %s19_s13, 6   ;;  %s4421_s10 = smov %s2935_s12 }
 0x2e1   : > { %s4422_s11 = smov %s4425_s14  ;;  %s4423_s12 = smov %s4429_s15 }
 0x2e2   :  { %18 = sbr.rel (!%p16_p13) target bundleno = 3 (0x3), region = 111 }

</bundles_post_ra>
